<compile_context>
chip_gen: v7x
topology: tpu7x:2x2x1
jax: 0.10.0
libtpu: 0.0.40
codegen_flags: <defaults>
</compile_context>

<pallas_src>
from functools import partial

import jax
import jax.numpy as jnp
from jax import lax
from jax.experimental import pallas as pl
from jax.experimental.pallas import tpu as pltpu

EPS = 1e-5
LANE = 128
SUBLANE = 8


def _round_up(n, m):
    return ((n + m - 1) // m) * m


def _cdiv(a, b):
    return -(-a // b)


def _batch_tiling(b):
    """Pick (batch_tile, padded_batch). Keeps padding minimal and gives >=2 batch
    programs (megacore) once the batch is large enough, with tiles capped near 512."""
    b8 = _round_up(max(b, 1), SUBLANE)
    if b8 <= 256:
        tiles = 1
    else:
        tiles = max(2, _cdiv(b8, 512))
    tb = _round_up(_cdiv(b8, tiles), SUBLANE)
    return tb, tb * tiles


# --------------------------------------------------------------------------------------
# Kernel. grid = (batch tiles [parallel], h1 tiles [arbitrary/reduction]).
# Weights for layers 1/2 stream along the h1 axis; layer-2 partial products accumulate
# in a VMEM f32 scratch; layer 3 runs on the last h1 step.
# --------------------------------------------------------------------------------------
def _frame_classifier_kernel(x_ref, w1_ref, b1_ref, w2_ref, b2_ref, w3_ref, b3_ref,
                             o_ref, xb_ref, acc_ref):
    k = pl.program_id(1)

    @pl.when(k == 0)
    def _init():
        # Cast the f32 input tile to bf16 once per batch tile (VPU), zero the accumulator.
        xb_ref[...] = x_ref[...].astype(jnp.bfloat16)
        acc_ref[...] = jnp.zeros_like(acc_ref)

    # Layer 1 (Linear with BN folded) on one h1 slice, then ReLU. Dropout = identity (eval).
    h = jnp.dot(xb_ref[...], w1_ref[...], preferred_element_type=jnp.float32) + b1_ref[...]
    h = jnp.maximum(h, 0.0)

    # Partial layer-2 matmul, accumulated over h1 slices in f32.
    acc_ref[...] += jnp.dot(h.astype(jnp.bfloat16), w2_ref[...],
                            preferred_element_type=jnp.float32)

    @pl.when(k == pl.num_programs(1) - 1)
    def _finalize():
        # Layer 2 bias (BN folded) + ReLU, then layer 3 (lane-padded to 128 classes).
        h2a = jnp.maximum(acc_ref[...] + b2_ref[...], 0.0)
        o_ref[...] = (jnp.dot(h2a.astype(jnp.bfloat16), w3_ref[...],
                              preferred_element_type=jnp.float32)
                      + b3_ref[...]).astype(o_ref.dtype)


# --------------------------------------------------------------------------------------
# One-time parameter preparation: fold BN, cast weights to bf16, pad final projection.
# --------------------------------------------------------------------------------------
def prepare_params(raw_params):
    (w1, b1, g1, be1, m1, v1,
     w2, b2, g2, be2, m2, v2,
     w3, b3) = raw_params

    s1 = g1 * lax.rsqrt(v1 + EPS)                         # (1, 1024)
    w1f = (w1 * s1).astype(jnp.bfloat16)                  # (in, 1024) bf16
    b1f = (b1 - m1) * s1 + be1                            # (1, 1024)  f32

    s2 = g2 * lax.rsqrt(v2 + EPS)                         # (1, 512)
    w2f = (w2 * s2).astype(jnp.bfloat16)                  # (1024, 512) bf16
    b2f = (b2 - m2) * s2 + be2                            # (1, 512)   f32

    num_classes = w3.shape[1]
    nc_pad = _round_up(num_classes, LANE)
    w3p = jnp.zeros((w3.shape[0], nc_pad), jnp.float32).at[:, :num_classes].set(w3)
    w3p = w3p.astype(jnp.bfloat16)                        # (512, 128) bf16
    b3p = jnp.zeros((1, nc_pad), jnp.float32).at[:, :num_classes].set(b3)

    return (w1f, b1f, w2f, b2f, w3p, b3p), num_classes


# --------------------------------------------------------------------------------------
# Forward wrapper (jitted per input shape).
# --------------------------------------------------------------------------------------
@partial(jax.jit, static_argnames=("num_classes",))
def frame_classifier_forward(x, prepped_params, *, num_classes):
    """x: (B, input_dim) float32 -> (B, num_classes) float32 (eval-mode forward)."""
    w1, b1, w2, b2, w3, b3 = prepped_params
    B, in_dim = x.shape
    h1 = w1.shape[1]
    h2 = w2.shape[1]
    nc_pad = w3.shape[1]

    tb, bp = _batch_tiling(B)
    if bp != B:
        x = jnp.pad(x, ((0, bp - B), (0, 0)))

    tk = 256 if (h1 % 256 == 0) else h1                   # h1 slice width
    n_bt = bp // tb
    n_k = h1 // tk
    grid = (n_bt, n_k)

    flops = 2 * bp * (in_dim * h1 + h1 * h2 + h2 * nc_pad)
    bytes_accessed = int(
        bp * in_dim * 4                                    # x read (f32, once per batch tile)
        + n_bt * (w1.size * 2 + b1.size * 4 + w2.size * 2) # streamed per batch tile
        + (b2.size * 4 + w3.size * 2 + b3.size * 4)        # constant-index params
        + bp * nc_pad * 4                                  # output writeback
    )

    out = pl.pallas_call(
        _frame_classifier_kernel,
        out_shape=jax.ShapeDtypeStruct((bp, nc_pad), jnp.float32),
        grid=grid,
        in_specs=[
            pl.BlockSpec((tb, in_dim), lambda i, k: (i, 0)),   # x tile (resident across k)
            pl.BlockSpec((in_dim, tk), lambda i, k: (0, k)),   # w1 slice (streams over k)
            pl.BlockSpec((1, tk),      lambda i, k: (0, k)),   # b1 slice
            pl.BlockSpec((tk, h2),     lambda i, k: (k, 0)),   # w2 slice (streams over k)
            pl.BlockSpec((1, h2),      lambda i, k: (0, 0)),   # b2 (constant)
            pl.BlockSpec((h2, nc_pad), lambda i, k: (0, 0)),   # w3 (constant)
            pl.BlockSpec((1, nc_pad),  lambda i, k: (0, 0)),   # b3 (constant)
        ],
        out_specs=pl.BlockSpec((tb, nc_pad), lambda i, k: (i, 0)),
        scratch_shapes=[
            pltpu.VMEM((tb, in_dim), jnp.bfloat16),            # bf16 copy of the x tile
            pltpu.VMEM((tb, h2), jnp.float32),                 # layer-2 accumulator
        ],
        compiler_params=pltpu.CompilerParams(
            dimension_semantics=("parallel", "arbitrary"),
            vmem_limit_bytes=32 * 1024 * 1024,
        ),
        cost_estimate=pl.CostEstimate(
            flops=flops, transcendentals=0, bytes_accessed=bytes_accessed),
    )(x, w1, b1, w2, b2, w3, b3)

    return out[:B, :num_classes]


# --------------------------------------------------------------------------------------
# Synthetic parameters matching the PyTorch module shapes (deterministic).
# --------------------------------------------------------------------------------------
def init_params(key, input_dim=2048, num_classes=8):
    h1, h2 = 1024, 512
    ks = jax.random.split(key, 10)

    def xavier(k, fan_in, fan_out):
        std = (2.0 / (fan_in + fan_out)) ** 0.5
        return jax.random.normal(k, (fan_in, fan_out), jnp.float32) * std

    # Linear: weight stored (in, out) so kernel computes x @ W (== x @ W_pt.T), bias (1, out).
    w1 = xavier(ks[0], input_dim, h1)
    b1 = jnp.zeros((1, h1), jnp.float32)
    w2 = xavier(ks[1], h1, h2)
    b2 = jnp.zeros((1, h2), jnp.float32)
    w3 = xavier(ks[2], h2, num_classes)
    b3 = jnp.zeros((1, num_classes), jnp.float32)

    # BatchNorm1d running stats + affine (non-trivial, deterministic).
    g1 = 1.0 + 0.1 * jax.random.normal(ks[3], (1, h1), jnp.float32)
    be1 = 0.1 * jax.random.normal(ks[4], (1, h1), jnp.float32)
    m1 = 0.05 * jax.random.normal(ks[5], (1, h1), jnp.float32)
    v1 = jnp.abs(jax.random.normal(ks[6], (1, h1), jnp.float32)) + 0.5

    g2 = 1.0 + 0.1 * jax.random.normal(ks[7], (1, h2), jnp.float32)
    be2 = 0.1 * jax.random.normal(ks[8], (1, h2), jnp.float32)
    m2 = 0.05 * jax.random.normal(ks[9], (1, h2), jnp.float32)
    v2 = jnp.abs(jax.random.normal(jax.random.fold_in(key, 123), (1, h2), jnp.float32)) + 0.5

    return (w1, b1, g1, be1, m1, v1,
            w2, b2, g2, be2, m2, v2,
            w3, b3)


# --------------------------------------------------------------------------------------
# References: (a) numerically-matched bf16 path, (b) full-f32 PyTorch eval semantics.
# --------------------------------------------------------------------------------------
def reference_forward_matched(x, prepped_params, num_classes):
    w1, b1, w2, b2, w3, b3 = prepped_params
    h = jnp.dot(x.astype(jnp.bfloat16), w1, preferred_element_type=jnp.float32) + b1
    h = jnp.maximum(h, 0.0)
    h = jnp.dot(h.astype(jnp.bfloat16), w2, preferred_element_type=jnp.float32) + b2
    h = jnp.maximum(h, 0.0)
    o = jnp.dot(h.astype(jnp.bfloat16), w3, preferred_element_type=jnp.float32) + b3
    return o[:, :num_classes]


def reference_forward_f32(x, raw_params):
    (w1, b1, g1, be1, m1, v1,
     w2, b2, g2, be2, m2, v2,
     w3, b3) = raw_params
    h = x @ w1 + b1
    h = (h - m1) / jnp.sqrt(v1 + EPS) * g1 + be1
    h = jnp.maximum(h, 0.0)
    h = h @ w2 + b2
    h = (h - m2) / jnp.sqrt(v2 + EPS) * g2 + be2
    h = jnp.maximum(h, 0.0)
    return h @ w3 + b3


if __name__ == "__main__":
    key = jax.random.PRNGKey(0)
    INPUT_DIM, NUM_CLASSES = 2048, 8

    k_x, k_p = jax.random.split(key)
    raw_params = init_params(k_p, input_dim=INPUT_DIM, num_classes=NUM_CLASSES)
    prepped, nc = prepare_params(raw_params)

    # Two batch sizes: tiny single-tile (8) and a multi-tile case (272 -> 2 batch programs).
    for B in (8, 272):
        x = jax.random.normal(jax.random.fold_in(k_x, B), (B, INPUT_DIM), jnp.float32)

        out = frame_classifier_forward(x, prepped, num_classes=nc)
        out = jax.block_until_ready(out)
        assert out.shape == (B, NUM_CLASSES), out.shape

        # Exact-ish check against the same bf16/f32-accumulate computation in plain JAX.
        ref_matched = reference_forward_matched(x, prepped, nc)
        err_m = float(jnp.max(jnp.abs(out - ref_matched)))
        assert jnp.allclose(out, ref_matched, atol=1e-2, rtol=1e-2), (B, err_m)

        # Semantic check against the full-f32 PyTorch eval-mode forward (bf16 weight
        # quantization introduces a small, bounded error).
        ref_f32 = reference_forward_f32(x, raw_params)
        err_f = float(jnp.max(jnp.abs(out - ref_f32)))
        assert jnp.allclose(out, ref_f32, atol=1e-1, rtol=1e-1), (B, err_f)

    print("KERNEL_OK")
</pallas_src>

<mosaic_0001>
module attributes {stable_mosaic.version = 11 : i64} {
  func.func @_frame_classifier_kernel(%arg0: i32, %arg1: i32, %arg2: memref<8x2048xf32, #tpu.memory_space<vmem>>, %arg3: memref<2048x256xbf16, #tpu.memory_space<vmem>>, %arg4: memref<1x256xf32, #tpu.memory_space<vmem>>, %arg5: memref<256x512xbf16, #tpu.memory_space<vmem>>, %arg6: memref<1x512xf32, #tpu.memory_space<vmem>>, %arg7: memref<512x128xbf16, #tpu.memory_space<vmem>>, %arg8: memref<1x128xf32, #tpu.memory_space<vmem>>, %arg9: memref<8x128xf32, #tpu.memory_space<vmem>>, %arg10: memref<8x2048xbf16, #tpu.memory_space<vmem>>, %arg11: memref<8x512xf32, #tpu.memory_space<vmem>>) attributes {dimension_semantics = [#tpu.dimension_semantics<parallel>, #tpu.dimension_semantics<arbitrary>], iteration_bounds = array<i64: 1, 4>, scalar_prefetch = 0 : i64, scratch_operands = 2 : i64, tpu.core_type = #tpu.core_type<tc>, window_params = [{transform_indices = @transform_0, window_bounds = array<i64: 8, 2048>}, {transform_indices = @transform_1, window_bounds = array<i64: 2048, 256>}, {transform_indices = @transform_2, window_bounds = array<i64: 1, 256>}, {transform_indices = @transform_3, window_bounds = array<i64: 256, 512>}, {pipeline_mode = #tpu.pipeline_mode<synchronous>, transform_indices = @transform_4, window_bounds = array<i64: 1, 512>}, {pipeline_mode = #tpu.pipeline_mode<synchronous>, transform_indices = @transform_5, window_bounds = array<i64: 512, 128>}, {pipeline_mode = #tpu.pipeline_mode<synchronous>, transform_indices = @transform_6, window_bounds = array<i64: 1, 128>}, {transform_indices = @transform_7, window_bounds = array<i64: 8, 128>}]} {
    %c0_i32 = arith.constant 0 : i32
    %0 = arith.cmpi eq, %arg1, %c0_i32 : i32
    %1 = arith.extui %0 : i1 to i32
    %c0_i32_0 = arith.constant 0 : i32
    %2 = arith.cmpi ne, %1, %c0_i32_0 : i32
    scf.if %2 {
      %c0_15 = arith.constant 0 : index
      %c0_16 = arith.constant 0 : index
      %20 = vector.load %arg2[%c0_15, %c0_16] : memref<8x2048xf32, #tpu.memory_space<vmem>>, vector<8x2048xf32>
      %21 = arith.truncf %20 : vector<8x2048xf32> to vector<8x2048xbf16>
      %c0_17 = arith.constant 0 : index
      %c0_18 = arith.constant 0 : index
      %22 = vector.load %arg10[%c0_17, %c0_18] : memref<8x2048xbf16, #tpu.memory_space<vmem>>, vector<8x2048xbf16>
      tpu.vector_store %arg10[%c0_17, %c0_18], %21 {strides = array<i32>} : memref<8x2048xbf16, #tpu.memory_space<vmem>>, vector<8x2048xbf16>,
      %cst_19 = arith.constant 0.000000e+00 : f32
      %23 = vector.broadcast %cst_19 : f32 to vector<8x512xf32>
      %c0_20 = arith.constant 0 : index
      %c0_21 = arith.constant 0 : index
      %24 = vector.load %arg11[%c0_20, %c0_21] : memref<8x512xf32, #tpu.memory_space<vmem>>, vector<8x512xf32>
      tpu.vector_store %arg11[%c0_20, %c0_21], %23 {strides = array<i32>} : memref<8x512xf32, #tpu.memory_space<vmem>>, vector<8x512xf32>,
    } else {
    }
    %c0 = arith.constant 0 : index
    %c0_1 = arith.constant 0 : index
    %3 = vector.load %arg10[%c0, %c0_1] : memref<8x2048xbf16, #tpu.memory_space<vmem>>, vector<8x2048xbf16>
    %c0_2 = arith.constant 0 : index
    %c0_3 = arith.constant 0 : index
    %4 = vector.load %arg3[%c0_2, %c0_3] : memref<2048x256xbf16, #tpu.memory_space<vmem>>, vector<2048x256xbf16>
    %cst = arith.constant dense<0.000000e+00> : vector<8x256xf32>
    %5 = tpu.matmul %3, %4, %cst {dimension_numbers = #tpu.dot_dimension_numbers<[1], [0], [0], [1], [0, 0, 1, 1], [], []>} : vector<8x2048xbf16>, vector<2048x256xbf16>, vector<8x256xf32> -> vector<8x256xf32>
    %c0_4 = arith.constant 0 : index
    %c0_5 = arith.constant 0 : index
    %6 = vector.load %arg4[%c0_4, %c0_5] : memref<1x256xf32, #tpu.memory_space<vmem>>, vector<1x256xf32>
    %7 = vector.broadcast %6 : vector<1x256xf32> to vector<8x256xf32>
    %8 = arith.addf %5, %7 : vector<8x256xf32>
    %cst_6 = arith.constant 0.000000e+00 : f32
    %9 = vector.broadcast %cst_6 : f32 to vector<8x256xf32>
    %10 = arith.maximumf %8, %9 : vector<8x256xf32>
    %c0_7 = arith.constant 0 : index
    %c0_8 = arith.constant 0 : index
    %11 = vector.load %arg11[%c0_7, %c0_8] : memref<8x512xf32, #tpu.memory_space<vmem>>, vector<8x512xf32>
    %12 = arith.truncf %10 : vector<8x256xf32> to vector<8x256xbf16>
    %c0_9 = arith.constant 0 : index
    %c0_10 = arith.constant 0 : index
    %13 = vector.load %arg5[%c0_9, %c0_10] : memref<256x512xbf16, #tpu.memory_space<vmem>>, vector<256x512xbf16>
    %cst_11 = arith.constant dense<0.000000e+00> : vector<8x512xf32>
    %14 = tpu.matmul %12, %13, %cst_11 {dimension_numbers = #tpu.dot_dimension_numbers<[1], [0], [0], [1], [0, 0, 1, 1], [], []>} : vector<8x256xbf16>, vector<256x512xbf16>, vector<8x512xf32> -> vector<8x512xf32>
    %15 = arith.addf %11, %14 : vector<8x512xf32>
    %c0_12 = arith.constant 0 : index
    %c0_13 = arith.constant 0 : index
    %16 = vector.load %arg11[%c0_12, %c0_13] : memref<8x512xf32, #tpu.memory_space<vmem>>, vector<8x512xf32>
    tpu.vector_store %arg11[%c0_12, %c0_13], %15 {strides = array<i32>} : memref<8x512xf32, #tpu.memory_space<vmem>>, vector<8x512xf32>,
    %c3_i32 = arith.constant 3 : i32
    %17 = arith.cmpi eq, %arg1, %c3_i32 : i32
    %18 = arith.extui %17 : i1 to i32
    %c0_i32_14 = arith.constant 0 : i32
    %19 = arith.cmpi ne, %18, %c0_i32_14 : i32
    scf.if %19 {
      %c0_15 = arith.constant 0 : index
      %c0_16 = arith.constant 0 : index
      %20 = vector.load %arg11[%c0_15, %c0_16] : memref<8x512xf32, #tpu.memory_space<vmem>>, vector<8x512xf32>
      %c0_17 = arith.constant 0 : index
      %c0_18 = arith.constant 0 : index
      %21 = vector.load %arg6[%c0_17, %c0_18] : memref<1x512xf32, #tpu.memory_space<vmem>>, vector<1x512xf32>
      %22 = vector.broadcast %21 : vector<1x512xf32> to vector<8x512xf32>
      %23 = arith.addf %20, %22 : vector<8x512xf32>
      %cst_19 = arith.constant 0.000000e+00 : f32
      %24 = vector.broadcast %cst_19 : f32 to vector<8x512xf32>
      %25 = arith.maximumf %23, %24 : vector<8x512xf32>
      %26 = arith.truncf %25 : vector<8x512xf32> to vector<8x512xbf16>
      %c0_20 = arith.constant 0 : index
      %c0_21 = arith.constant 0 : index
      %27 = vector.load %arg7[%c0_20, %c0_21] : memref<512x128xbf16, #tpu.memory_space<vmem>>, vector<512x128xbf16>
      %cst_22 = arith.constant dense<0.000000e+00> : vector<8x128xf32>
      %28 = tpu.matmul %26, %27, %cst_22 {dimension_numbers = #tpu.dot_dimension_numbers<[1], [0], [0], [1], [0, 0, 1, 1], [], []>} : vector<8x512xbf16>, vector<512x128xbf16>, vector<8x128xf32> -> vector<8x128xf32>
      %c0_23 = arith.constant 0 : index
      %c0_24 = arith.constant 0 : index
      %29 = vector.load %arg8[%c0_23, %c0_24] : memref<1x128xf32, #tpu.memory_space<vmem>>, vector<1x128xf32>
      %30 = vector.broadcast %29 : vector<1x128xf32> to vector<8x128xf32>
      %31 = arith.addf %28, %30 : vector<8x128xf32>
      %c0_25 = arith.constant 0 : index
      %c0_26 = arith.constant 0 : index
      %32 = vector.load %arg9[%c0_25, %c0_26] : memref<8x128xf32, #tpu.memory_space<vmem>>, vector<8x128xf32>
      tpu.vector_store %arg9[%c0_25, %c0_26], %31 {strides = array<i32>} : memref<8x128xf32, #tpu.memory_space<vmem>>, vector<8x128xf32>,
    } else {
    }
    return
  }
  func.func @transform_0(%arg0: i32, %arg1: i32) -> (i32, i32) {
    %c0_i32 = arith.constant 0 : i32
    %c0_i32_0 = arith.constant 0 : i32
    return %arg0, %c0_i32 : i32, i32
  }
  func.func @transform_1(%arg0: i32, %arg1: i32) -> (i32, i32) {
    %c0_i32 = arith.constant 0 : i32
    %c0_i32_0 = arith.constant 0 : i32
    return %c0_i32, %arg1 : i32, i32
  }
  func.func @transform_2(%arg0: i32, %arg1: i32) -> (i32, i32) {
    %c0_i32 = arith.constant 0 : i32
    %c0_i32_0 = arith.constant 0 : i32
    return %c0_i32, %arg1 : i32, i32
  }
  func.func @transform_3(%arg0: i32, %arg1: i32) -> (i32, i32) {
    %c0_i32 = arith.constant 0 : i32
    %c0_i32_0 = arith.constant 0 : i32
    return %arg1, %c0_i32 : i32, i32
  }
  func.func @transform_4(%arg0: i32, %arg1: i32) -> (i32, i32) {
    %c0_i32 = arith.constant 0 : i32
    %c0_i32_0 = arith.constant 0 : i32
    %c0_i32_1 = arith.constant 0 : i32
    return %c0_i32, %c0_i32_0 : i32, i32
  }
  func.func @transform_5(%arg0: i32, %arg1: i32) -> (i32, i32) {
    %c0_i32 = arith.constant 0 : i32
    %c0_i32_0 = arith.constant 0 : i32
    %c0_i32_1 = arith.constant 0 : i32
    return %c0_i32, %c0_i32_0 : i32, i32
  }
  func.func @transform_6(%arg0: i32, %arg1: i32) -> (i32, i32) {
    %c0_i32 = arith.constant 0 : i32
    %c0_i32_0 = arith.constant 0 : i32
    %c0_i32_1 = arith.constant 0 : i32
    return %c0_i32, %c0_i32_0 : i32, i32
  }
  func.func @transform_7(%arg0: i32, %arg1: i32) -> (i32, i32) {
    %c0_i32 = arith.constant 0 : i32
    %c0_i32_0 = arith.constant 0 : i32
    return %arg0, %c0_i32 : i32, i32
  }
}

</mosaic_0001>

<bundles_post_ra>
// kernel: frame_classifier_forward.1
= control target key start
LH: loop header
LB: loop body
LE: loop exit
PB: predicated region body
PF: predicated region fallthrough
CT: control target
= control target key end

     0   :  { %s5708_s0 = inlined_call_operand.hbm [shape: f32[8,2048], index: 0, kind: input, shape index: {}]   ;;  %s5709_s1 = inlined_call_operand.hbm [shape: bf16[2048,1024], index: 1, kind: input, shape index: {}]   ;;  %s5710_s2 = inlined_call_operand.hbm [shape: f32[1,1024], index: 2, kind: input, shape index: {}]   ;;  %s5711_s3 = inlined_call_operand.hbm [shape: bf16[1024,512], index: 3, kind: input, shape index: {}]   ;;  %s5712_s4 = inlined_call_operand.hbm [shape: f32[1,512], index: 4, kind: input, shape index: {}]   ;;  %s5713_s5 = inlined_call_operand.hbm [shape: bf16[512,128], index: 5, kind: input, shape index: {}]   ;;  %s5714_s6 = inlined_call_operand.hbm [shape: f32[1,128], index: 6, kind: input, shape index: {}]   ;;  %s5715_s7 = inlined_call_operand.hbm [shape: f32[8,128], index: 7, kind: output, shape index: {}]  }
   0x1   :  { %5733 = sst [smem:[#allocation28_spill]] %s5709_s1 }
   0x2   :  { %5734 = sst [smem:[#allocation29_spill]] %s5712_s4 }
   0x3   :  { %5735 = sst [smem:[#allocation30_spill]] %s5713_s5 }
   0x4   :  { %5736 = sst [smem:[#allocation31_spill]] %s5715_s7 }
   0x5   :  { %12 = vsyncpa [#allocation5], 0 }
   0x6   :  { %13 = vsyncpa [#allocation8], 0 }
   0x7   :  { %15 = vsyncpa [#allocation8 + $0x1], 0 }
   0x8   :  { %16 = vsyncpa [#allocation11], 0 }
   0x9   :  { %18 = vsyncpa [#allocation11 + $0x1], 0 }
   0xa   :  { %19 = vsyncpa [#allocation14], 0 }
   0xb   :  { %20 = vsyncpa [#allocation6], 0  ;;  %s4998_s24 = smov 0   ;;  %s5000_s25 = smov 0  }
   0xc   :  { %s5002_s26 = smov 0   ;;  %s5004_s27 = smov 0  }
   0xd   :  { %s5006_s28 = smov 0   ;;  %s5008_s29 = smov 0  }
   0xe LB: > { %5737 = sst [smem:[#allocation23_spill]] %s4928_s26  ;;  %s5027_s30 = sadd.s32 4294967295, %s4940_s29   ;;  %s4940_s29 = sphi %s5008_s29, %s26_s29   ;;  %s4936_s28 = sphi %s5006_s28, %s5775_s28   ;;  %s4932_s27 = sphi %s5004_s27, %s5774_s27   ;;  %s4928_s26 = sphi %s5002_s26, %s5770_s26   ;;  %s4924_s25 = sphi %s5000_s25, %s5773_s25   ;;  %s4920_s24 = sphi %s4998_s24, %s5772_s24  }
   0xf   : > { %5738 = sst [smem:[#allocation24_spill]] %s4932_s27  ;;  %p84_p0 = scmp.ne.s32.totalorder %s4924_s25, %s4920_s24 }
  0x10   : > { %p5716_p1 = scmp.eq.s32.totalorder %s5027_s30, 0  ;;  %p3502_p2 = scmp.ge.s32.totalorder %s4940_s29, 1 }
  0x11   : > { %p236_p3 = scmp.lt.s32.totalorder %s4940_s29, 5  ;;  %s4942_s10 = smov [#allocation12]  }
  0x12   : > { %p5035_p4 = por %p5716_p1, %p84_p0  ;;  %s263_s11 = sshll.u32 %s4942_s10, 4  ;;  %s264_s11 = int_to_ptr.vmem [resolvable:$true] %s263_s11 }
  0x13   : > { %p5039_p5 = pnand %p3502_p2, %p236_p3  ;;  %s4943_s12 = smov [#allocation13]  }
  0x14   : > { %s5739_s8 = scalar_select %p5035_p4, 1, 0 }
  0x15   : > { %s5741_s9 = scalar_select %p5039_p5, 1, 0 }
  0x16   : > { %5740 = sst [smem:[#allocation25_spill]] %s5739_s8  ;;  %p4019_p6 = pneg %p5039_p5 }
  0x17   : > { %s273_s13 = sshll.u32 %s4943_s12, 4  ;;  %s5743_s4 = sld [smem:[#allocation29_spill]]  ;;  %s5051_s13 = int_to_ptr.vmem [resolvable:$true] %s273_s13 }
  0x18   : > { %p5047_p7 = pnand %p4019_p6, %p5716_p1 }
  0x1a   : > { %s5742_s14 = scalar_select %p5047_p7, 1, 0 }
  0x1b   : > { %p5061_p9 = pneg %p5047_p7 }
  0x1d   : > { %s4642_s17 = scalar_lea.hbm %s5743_s4, 64 }
  0x1e   : > { %p4643_p8 = scmp.ne.s32.totalorder %s5743_s4, %s4642_s17  ;;  %p4649_p12 = scmp.lt.u32.totalorder %s4642_s17, %s5743_s4 }
  0x1f   : > { %s5744_s20 = scalar_select %p5061_p9, 1, 0 }
  0x20   : > { %p4645_p10 = pnand %p5061_p9, %p4643_p8 }
  0x22   : > { %p4646_p11 = pneg %p4645_p10 }
  0x24   : > { %p4651_p13 = pnand %p4649_p12, %p4646_p11 }
  0x26   : > { %4654 = shalt.err (!%p4651_p13)
}
  0x27   : > { %s4655_s23 = scalar_lea.vmem %s264_s11, 64  ;;  %p4663_p6 = scmp.lt.s32.totalorder %s264_s11, %s264_s11 }
  0x28   : > { %p4656_p0 = scmp.ne.s32.totalorder %s264_s11, %s4655_s23  ;;  %p4664_p1 = scmp.lt.s32.totalorder %s4655_s23, %s4655_s23 }
  0x2a   : > { %p4658_p2 = pnand %p4656_p0, %p5061_p9  ;;  %p4665_p4 = por %p4664_p1, %p4663_p6 }
  0x2c   : > { %p4659_p3 = pneg %p4658_p2 }
  0x2e   : > { %p4666_p5 = pnand %p4665_p4, %p4659_p3 }
  0x30   : > { %4669 = shalt.err (!%p4666_p5)
}
  0x31   : > { %4025 = dma.hbm_to_vmem [thread:$0]  (!%p5047_p7), %s5743_s4, 64, %s264_s11, [#allocation11]  }
  0x32   : > { %s5745_s5 = sld [smem:[#allocation30_spill]] }
  0x38   : > { %s4670_s16 = scalar_lea.hbm %s5745_s5, 4096 }
  0x39   : > { %p4671_p8 = scmp.ne.s32.totalorder %s5745_s5, %s4670_s16  ;;  %p4677_p4 = scmp.lt.u32.totalorder %s4670_s16, %s5745_s5 }
  0x3b   : > { %p4673_p10 = pnand %p4671_p8, %p5061_p9 }
  0x3d   : > { %p4674_p1 = pneg %p4673_p10 }
  0x3f   : > { %p4679_p5 = pnand %p4677_p4, %p4674_p1 }
  0x41   : > { %4682 = shalt.err (!%p4679_p5)
}
  0x42   : > { %s4683_s11 = scalar_lea.vmem %s5051_s13, 4096  ;;  %p4691_p0 = scmp.lt.s32.totalorder %s5051_s13, %s5051_s13 }
  0x43   : > { %p4684_p11 = scmp.ne.s32.totalorder %s5051_s13, %s4683_s11  ;;  %p4692_p2 = scmp.lt.s32.totalorder %s4683_s11, %s4683_s11 }
  0x45   : > { %p4686_p12 = pnand %p4684_p11, %p5061_p9  ;;  %p4693_p3 = por %p4692_p2, %p4691_p0 }
  0x47   : > { %p4687_p13 = pneg %p4686_p12 }
  0x49   : > { %p4694_p6 = pnand %p4693_p3, %p4687_p13 }
  0x4b   : > { %4697 = shalt.err (!%p4694_p6)
}
  0x4c   : > { %s4944_s22 = smov 64   ;;  %s4945_s23 = smov 4  }
  0x4d   : > { %4028 = dma.hbm_to_vmem [thread:$0]  (!%p5047_p7), %s5745_s5, 4096, %s5051_s13, [#allocation14], %s4944_s22, %s4944_s22, %s4945_s23  }
  0x4e   : > { %s35_s12 = sadd.s32 1, %s4936_s28  ;;  %s71_s15 = sadd.s32 1, %s4928_s26 }
  0x4f   : > { %p36_p8 = scmp.ge.s32.totalorder %s35_s12, 4  ;;  %p78_p10 = scmp.ne.s32.totalorder %s4928_s26, %s4924_s25 }
  0x50   : > { %p79_p1 = scmp.eq.s32.totalorder %s4940_s29, 0  ;;  %p4046_p4 = scmp.lt.s32.totalorder %s4940_s29, 4 }
  0x51   : > { %s5777_s12 = smov (%p36_p8, %s35_s12), 0  ;;  %s5719_s16 = sand.u32 1, %s4940_s29  }
  0x52   : > { %5746 = sst [smem:[#allocation26_spill]] %s5777_s12  ;;  %p80_p5 = por %p79_p1, %p78_p10 }
  0x53   : > { %s68_s17 = ssub.s32 %s4936_s28, %s5777_s12  ;;  %s5112_s18 = sand.u32 1, %s4928_s26  }
  0x54   : > { %p69_p11 = scmp.eq.s32.totalorder %s68_s17, 0  ;;  %s3508_s19 = sshll.u32 %s5112_s18, 11 }
  0x55   : > { %s3909_s13 = sshll.u32 %s4936_s28, 7  ;;  %s5748_s1 = sld [smem:[#allocation28_spill]] }
  0x56   : > { %s5117_s21 = scalar_select %p69_p11, %s4928_s26, %s71_s15  }
  0x57   : > { %s302_s24 = scalar_lea.vmem [#allocation7], %s3508_s19  ;;  %p5126_p12 = pnand %p4046_p4, %p80_p5 }
  0x58   : > { %5747 = sst [smem:[#allocation27_spill]] %s5117_s21  ;;  %s309_s10 = sshll.u32 %s302_s24, 4  ;;  %s5130_s10 = int_to_ptr.vmem [resolvable:$true] %s309_s10 }
  0x59   : > { %s5749_s17 = scalar_select %p5126_p12, 1, 0 }
  0x5a   : > { %s5134_s15 = scalar_lea.sflag [#allocation8], %s5719_s16  ;;  %p5140_p0 = pneg %p5126_p12 }
  0x5b   : > { %s5122_s23 = scalar_lea.hbm %s5748_s1, %s3909_s13  ;;  %s4703_s24 = scalar_lea.hbm %s5748_s1, 131072 }
  0x5c   : > { %s4698_s11 = scalar_lea.hbm %s5122_s23, 32768  ;;  %p4704_p6 = scmp.lt.u32.totalorder %s5122_s23, %s5748_s1 }
  0x5d   : > { %p4699_p13 = scmp.ne.s32.totalorder %s5122_s23, %s4698_s11  ;;  %p4705_p8 = scmp.lt.u32.totalorder %s4703_s24, %s4698_s11 }
  0x5e   : > { %s5750_s13 = scalar_select %p5140_p0, 1, 0 }
  0x5f   : > { %p4701_p2 = pnand %p5140_p0, %p4699_p13  ;;  %p4706_p10 = por %p4705_p8, %p4704_p6 }
  0x60   : > { %p4707_p1 = scmp.lt.u32.totalorder %s4698_s11, %s5122_s23 }
  0x61   : > { %p4702_p3 = pneg %p4701_p2 }
  0x62   : > { %p4708_p4 = por %p4707_p1, %p4706_p10 }
  0x64   : > { %p4709_p5 = pnand %p4708_p4, %p4702_p3 }
  0x66   : > { %4712 = shalt.err (!%p4709_p5)
}
  0x67   : > { %s4713_s16 = scalar_lea.vmem %s5130_s10, 32768  ;;  %s4946_s19 = smov [#allocation7]  }
  0x68   : > { %p4714_p11 = scmp.ne.s32.totalorder %s5130_s10, %s4713_s16  ;;  %s4718_s22 = sshll.u32 %s4946_s19, 4  ;;  %s4719_s22 = int_to_ptr.vmem [resolvable:$false] %s4718_s22 }
  0x69   : > { %s4720_s4 = scalar_lea.vmem %s4719_s22, 65536  ;;  %p4721_p7 = scmp.lt.s32.totalorder %s5130_s10, %s4719_s22 }
  0x6a   : > { %p4716_p13 = pnand %p4714_p11, %p5140_p0  ;;  %p4722_p9 = scmp.lt.s32.totalorder %s4720_s4, %s4713_s16 }
  0x6c   : > { %p4717_p2 = pneg %p4716_p13  ;;  %p4723_p6 = por %p4722_p9, %p4721_p7 }
  0x6e   : > { %p4724_p8 = pnand %p4723_p6, %p4717_p2 }
  0x70   : > { %4727 = shalt.err (!%p4724_p8)
}
  0x71   : > { %s4947_s5 = smov 512   ;;  %s4948_s11 = smov 128  }
  0x72   : > { %s4949_s24 = smov 8   ;;  %s4950_s1 = smov [#allocation4]  }
  0x73   : > { %4035 = dma.hbm_to_vmem [thread:$0]  (!%p5126_p12), %s5122_s23, 32768, %s5130_s10, %s5134_s15, %s4947_s5, %s4948_s11, %s4949_s24  }
  0x74   : > { %s252_s12 = sshll.u32 %s4950_s1, 4  ;;  %s4951_s19 = smov [#allocation15]   ;;  %s253_s12 = int_to_ptr.vmem [resolvable:$true] %s252_s12 }
  0x75   : > { %s287_s21 = sshll.u32 %s4951_s19, 4  ;;  %s4728_s4 = scalar_lea.hbm %s5708_s0, 2048  ;;  %s288_s21 = int_to_ptr.vmem [resolvable:$true] %s287_s21 }
  0x76   : > { %p4729_p7 = scmp.ne.s32.totalorder %s5708_s0, %s4728_s4  ;;  %p5751_p9 = scmp.ne.s32.totalorder %s5744_s20, 0 }
  0x77   : > { %p4735_p1 = scmp.lt.u32.totalorder %s4728_s4, %s5708_s0 }
  0x78   : > { %p4731_p3 = pnand %p4729_p7, %p5751_p9 }
  0x7a   : > { %p4732_p10 = pneg %p4731_p3 }
  0x7c   : > { %p4737_p4 = pnand %p4735_p1, %p4732_p10 }
  0x7e   : > { %4740 = shalt.err (!%p4737_p4)
}
  0x7f   : > { %s4741_s1 = scalar_lea.vmem %s253_s12, 2048  ;;  %p4749_p2 = scmp.lt.s32.totalorder %s253_s12, %s253_s12 }
  0x80   : > { %p4742_p5 = scmp.ne.s32.totalorder %s253_s12, %s4741_s1  ;;  %p4750_p6 = scmp.lt.s32.totalorder %s4741_s1, %s4741_s1 }
  0x82   : > { %p4744_p11 = pnand %p4742_p5, %p5751_p9  ;;  %p4751_p8 = por %p4750_p6, %p4749_p2 }
  0x84   : > { %p4745_p13 = pneg %p4744_p11 }
  0x86   : > { %p4752_p12 = pnand %p4751_p8, %p4745_p13 }
  0x88   : > { %4755 = shalt.err (!%p4752_p12)
}
  0x89   : > { %p5752_p7 = scmp.ne.s32.totalorder %s5742_s14, 0  ;;  %s3511_s27 = sshll.u32 %s5112_s18, 1 }
  0x8a   : > { %s4756_s10 = scalar_lea.hbm %s5714_s6, 16 }
  0x8b   : > { %4022 = dma.hbm_to_vmem [thread:$0]  (!%p5752_p7), %s5708_s0, 2048, %s253_s12, [#allocation5]  }
  0x8c   : > { %p4757_p3 = scmp.ne.s32.totalorder %s5714_s6, %s4756_s10  ;;  %p4763_p1 = scmp.lt.u32.totalorder %s4756_s10, %s5714_s6 }
  0x8e   : > { %p4759_p12 = pnand %p4757_p3, %p5751_p9 }
  0x90   : > { %p4760_p10 = pneg %p4759_p12 }
  0x92   : > { %p4765_p4 = pnand %p4763_p1, %p4760_p10 }
  0x94   : > { %4768 = shalt.err (!%p4765_p4)
}
  0x95   : > { %s4769_s12 = scalar_lea.vmem %s288_s21, 16  ;;  %s4776_s22 = scalar_lea.vmem %s288_s21, 32 }
  0x96   : > { %p4770_p5 = scmp.ne.s32.totalorder %s288_s21, %s4769_s12  ;;  %p4777_p2 = scmp.lt.s32.totalorder %s288_s21, %s288_s21 }
  0x97   : > { %p4778_p6 = scmp.lt.s32.totalorder %s4776_s22, %s4769_s12 }
  0x98   : > { %p4772_p11 = pnand %p4770_p5, %p5751_p9 }
  0x99   : > { %p4779_p8 = por %p4778_p6, %p4777_p2 }
  0x9a   : > { %p4773_p13 = pneg %p4772_p11 }
  0x9c   : > { %p4780_p0 = pnand %p4779_p8, %p4773_p13 }
  0x9e   : > { %4783 = shalt.err (!%p4780_p0)
}
  0x9f   : > { %4031 = dma.hbm_to_vmem [thread:$0]  (!%p5752_p7), %s5714_s6, 16, %s288_s21, [#allocation14]  }
  0xa0   : > { %s3910_s1 = sshll.u32 %s4936_s28, 5  ;;  %s323_s8 = scalar_lea.vmem [#allocation9], %s3511_s27 }
  0xa1   : > { %s5205_s20 = scalar_lea.hbm %s5710_s2, %s3910_s1  ;;  %s331_s23 = sshll.u32 %s323_s8, 4  ;;  %s332_s23 = int_to_ptr.vmem [resolvable:$true] %s331_s23 }
  0xa2   : > { %s4784_s14 = scalar_lea.hbm %s5205_s20, 32  ;;  %p5753_p9 = scmp.ne.s32.totalorder %s5750_s13, 0 }
  0xa3   : > { %p4785_p0 = scmp.ne.s32.totalorder %s5205_s20, %s4784_s14  ;;  %s4789_s5 = scalar_lea.hbm %s5710_s2, 128 }
  0xa4   : > { %p4790_p7 = scmp.lt.u32.totalorder %s5205_s20, %s5710_s2  ;;  %p4791_p10 = scmp.lt.u32.totalorder %s4789_s5, %s4784_s14 }
  0xa5   : > { %p4787_p3 = pnand %p4785_p0, %p5753_p9  ;;  %p4793_p4 = scmp.lt.u32.totalorder %s4784_s14, %s5205_s20 }
  0xa6   : > { %p4792_p1 = por %p4791_p10, %p4790_p7 }
  0xa7   : > { %p4788_p12 = pneg %p4787_p3 }
  0xa8   : > { %p4794_p5 = por %p4793_p4, %p4792_p1 }
  0xaa   : > { %p4795_p11 = pnand %p4794_p5, %p4788_p12 }
  0xac   : > { %4798 = shalt.err (!%p4795_p11)
}
  0xad   : > { %s4799_s27 = scalar_lea.vmem %s332_s23, 32  ;;  %s4952_s19 = smov [#allocation9]  }
  0xae   : > { %p4800_p13 = scmp.ne.s32.totalorder %s332_s23, %s4799_s27  ;;  %s4804_s12 = sshll.u32 %s4952_s19, 4  ;;  %s4805_s12 = int_to_ptr.vmem [resolvable:$false] %s4804_s12 }
  0xaf   : > { %s4806_s22 = scalar_lea.vmem %s4805_s12, 64  ;;  %p4807_p8 = scmp.lt.s32.totalorder %s332_s23, %s4805_s12 }
  0xb0   : > { %p4802_p2 = pnand %p4800_p13, %p5753_p9  ;;  %p4808_p0 = scmp.lt.s32.totalorder %s4806_s22, %s4799_s27 }
  0xb2   : > { %p4803_p6 = pneg %p4802_p2  ;;  %p4809_p3 = por %p4808_p0, %p4807_p8 }
  0xb4   : > { %p4810_p7 = pnand %p4809_p3, %p4803_p6 }
  0xb6   : > { %4813 = shalt.err (!%p4810_p7)
}
  0xb7   : > { %p5754_p10 = scmp.ne.s32.totalorder %s5749_s17, 0  ;;  %s3514_s16 = sshll.u32 %s5112_s18, 9 }
  0xb8   : > { %s3912_s4 = sshll.u32 %s4936_s28, 13  ;;  %s342_s8 = scalar_lea.vmem [#allocation10], %s3514_s16 }
  0xb9   : > { %4038 = dma.hbm_to_vmem [thread:$0]  (!%p5754_p10), %s5205_s20, 32, %s332_s23, %s5134_s15  }
  0xba   : > { %s5230_s26 = scalar_lea.hbm %s5711_s3, %s3912_s4  ;;  %s350_s14 = sshll.u32 %s342_s8, 4  ;;  %s5232_s14 = int_to_ptr.vmem [resolvable:$true] %s350_s14 }
  0xbb   : > { %s5755_s10 = sand.u32 1, %s4940_s29   ;;  %s4814_s5 = scalar_lea.hbm %s5230_s26, 8192 }
  0xbc   : > { %s5236_s21 = scalar_lea.sflag [#allocation11], %s5755_s10  ;;  %p4815_p12 = scmp.ne.s32.totalorder %s5230_s26, %s4814_s5 }
  0xbd   : > { %s4819_s20 = scalar_lea.hbm %s5711_s3, 32768  ;;  %p4820_p5 = scmp.lt.u32.totalorder %s5230_s26, %s5711_s3 }
  0xbe   : > { %p4817_p1 = pnand %p4815_p12, %p5753_p9  ;;  %p4821_p11 = scmp.lt.u32.totalorder %s4819_s20, %s4814_s5 }
  0xbf   : > { %p4823_p2 = scmp.lt.u32.totalorder %s4814_s5, %s5230_s26 }
  0xc0   : > { %p4818_p4 = pneg %p4817_p1  ;;  %p4822_p13 = por %p4821_p11, %p4820_p5 }
  0xc2   : > { %p4824_p6 = por %p4823_p2, %p4822_p13 }
  0xc4   : > { %p4825_p8 = pnand %p4824_p6, %p4818_p4 }
  0xc6   : > { %4828 = shalt.err (!%p4825_p8)
}
  0xc7   : > { %s4829_s24 = scalar_lea.vmem %s5232_s14, 8192  ;;  %s4953_s27 = smov [#allocation10]  }
  0xc8   : > { %p4830_p0 = scmp.ne.s32.totalorder %s5232_s14, %s4829_s24  ;;  %s4834_s19 = sshll.u32 %s4953_s27, 4  ;;  %s4835_s19 = int_to_ptr.vmem [resolvable:$false] %s4834_s19 }
  0xc9   : > { %s4836_s12 = scalar_lea.vmem %s4835_s19, 16384  ;;  %p4837_p12 = scmp.lt.s32.totalorder %s5232_s14, %s4835_s19 }
  0xca   : > { %p4832_p3 = pnand %p4830_p0, %p5753_p9  ;;  %p4838_p1 = scmp.lt.s32.totalorder %s4836_s12, %s4829_s24 }
  0xcc   : > { %p4833_p7 = pneg %p4832_p3  ;;  %p4839_p5 = por %p4838_p1, %p4837_p12 }
  0xce   : > { %p4840_p11 = pnand %p4839_p5, %p4833_p7 }
  0xd0   : > { %4843 = shalt.err (!%p4840_p11)
}
  0xd1   : > { %s4954_s22 = smov 256   ;;  %s4955_s16 = smov 16  }
  0xd2   : > { %4041 = dma.hbm_to_vmem [thread:$0]  (!%p5754_p10), %s5230_s26, 8192, %s5232_s14, %s5236_s21, %s4954_s22, %s4954_s22, %s4955_s16  }
  0xd3   : > { %p5756_p9 = scmp.ne.s32.totalorder %s5741_s9, 0 }
  0xd4   : > { %p5757_p4 = scmp.eq.s32.totalorder (!%p5756_p9), %s5027_s30, 0 }
  0xd5   : > { %362 = sbr.rel (%p5756_p9) target bundleno = 1342 (0x53e), region = 48 }
  0xdc   : > { %4895 = dma.done.wait (%p5757_p4), [#allocation5], 2048   ;;  %p5758_p13 = pmov %p5757_p4 }
  0xdd   : > { %s5759_s13 = sld [smem:[#allocation25_spill]]  ;;  %s368_s4 = sand.u32 1, %s5027_s30  }
  0xde   : > { %4897 = vsyncadd (%p5758_p13), [#allocation5], 4294965248  ;;  %s370_s1 = sand.u32 1, %s4924_s25   ;;  %s369_s8 = scalar_lea.sflag [#allocation8], %s368_s4 }
  0xdf   : > { %s3520_s7 = sshll.u32 %s370_s1, 11 }
  0xe0   : > { %s5268_s10 = scalar_lea.vmem [#allocation7], %s3520_s7 }
  0xe3   : > { %p5760_p2 = scmp.ne.s32.totalorder %s5759_s13, 0 }
  0xe5   : > { %4899 = dma.done.wait (%p5760_p2), %s369_s8, 32800  }
  0xe6   : > { %4901 = vsyncadd (%p5760_p2), %s369_s8, 4294934496  ;;  %s3521_s9 = sshll.u32 %s370_s1, 1  ;;  %s3522_s17 = sshll.u32 %s370_s1, 9 }
  0xe7   : > { %s5274_s26 = scalar_lea.vmem [#allocation9], %s3521_s9  ;;  %s387_s14 = scalar_lea.sflag [#allocation11], %s368_s4 }
  0xe8   : > { %s5276_s21 = scalar_lea.vmem [#allocation10], %s3522_s17 }
  0xe9   : > { %4903 = dma.done.wait (%p5760_p2), %s387_s14, 8192  }
  0xea   : > { %4905 = vsyncadd (%p5760_p2), %s387_s14, 4294959104  ;;  %p5761_p10 = pmov %p5757_p4 }
  0xeb   : > { %p5762_p6 = pmov %p5757_p4 }
  0xec   : > { %4907 = dma.done.wait (%p5761_p10), [#allocation11], 64  }
  0xed   : > { %4909 = vsyncadd (%p5762_p6), [#allocation11], 4294967232  ;;  %p5763_p8 = pmov %p5757_p4 }
  0xee   : > { %p5764_p0 = pmov %p5757_p4 }
  0xef   : > { %4911 = dma.done.wait (%p5763_p8), [#allocation14], 4112  }
  0xf0   : > { %4913 = vsyncadd (%p5764_p0), [#allocation14], 4294963184  ;;  %s5765_s5 = sld [smem:[#allocation24_spill]] }
  0xf6   : > { %p3526_p3 = scmp.ne.s32.totalorder %s5765_s5, 0 }
  0xf7   : > { %v446_v0 = vld [vmem:[#allocation4] sm:$0xff] (!%p3526_p3)  ;;  %v447_v1 = vld [vmem:[#allocation4 + $0x8] sm:$0xff] (!%p3526_p3)  ;;  %v448_v2 = vld [vmem:[#allocation4 + $0x10] sm:$0xff] (!%p3526_p3)  ;;  %v4956_v7 = vmov (!%p3526_p3), 0.0  }
  0xf8   : > { %445 = sbr.rel (%p3526_p3) target bundleno = 257 (0x101), region = 80  ;;  %v3913_v3 = vpack.c.bf16 (!%p3526_p3), %v447_v1, %v446_v0  ;;  %v449_v4 = vld [vmem:[#allocation4 + $0x18] sm:$0xff] (!%p3526_p3)  ;;  %v450_v5 = vld [vmem:[#allocation4 + $0x20] sm:$0xff] (!%p3526_p3)  ;;  %v451_v6 = vld [vmem:[#allocation4 + $0x28] sm:$0xff] (!%p3526_p3)  ;;  %534 = vst [vmem:[#allocation3] sm:$0xff] (!%p3526_p3), %v4956_v7 }
  0xf9   : > { %535 = vst [vmem:[#allocation3 + $0x8] sm:$0xff] (!%p3526_p3), %v4956_v7  ;;  %536 = vst [vmem:[#allocation3 + $0x10] sm:$0xff] (!%p3526_p3), %v4956_v7  ;;  %v3914_v8 = vpack.c.bf16 (!%p3526_p3), %v449_v4, %v448_v2  ;;  %v3915_v9 = vpack.c.bf16 (!%p3526_p3), %v451_v6, %v450_v5  ;;  %v452_v10 = vld [vmem:[#allocation4 + $0x30] sm:$0xff] (!%p3526_p3)  ;;  %v453_v11 = vld [vmem:[#allocation4 + $0x38] sm:$0xff] (!%p3526_p3) }
  0xfa   : > { %537 = vst [vmem:[#allocation3 + $0x18] sm:$0xff] (!%p3526_p3), %v4956_v7  ;;  %v454_v12 = vld [vmem:[#allocation4 + $0x40] sm:$0xff] (!%p3526_p3)  ;;  %526 = vst [vmem:[#allocation2] sm:$0xff] (!%p3526_p3), %v3913_v3  ;;  %v3916_v13 = vpack.c.bf16 (!%p3526_p3), %v453_v11, %v452_v10  ;;  %v455_v14 = vld [vmem:[#allocation4 + $0x48] sm:$0xff] (!%p3526_p3) }
  0xfb   : > { %v456_v15 = vld [vmem:[#allocation4 + $0x50] sm:$0xff] (!%p3526_p3)  ;;  %v457_v16 = vld [vmem:[#allocation4 + $0x58] sm:$0xff] (!%p3526_p3)  ;;  %527 = vst [vmem:[#allocation2 + $0x8] sm:$0xff] (!%p3526_p3), %v3914_v8  ;;  %528 = vst [vmem:[#allocation2 + $0x10] sm:$0xff] (!%p3526_p3), %v3915_v9  ;;  %v3917_v17 = vpack.c.bf16 (!%p3526_p3), %v455_v14, %v454_v12 }
  0xfc   : > { %v3918_v18 = vpack.c.bf16 (!%p3526_p3), %v457_v16, %v456_v15  ;;  %v458_v19 = vld [vmem:[#allocation4 + $0x60] sm:$0xff] (!%p3526_p3)  ;;  %v459_v20 = vld [vmem:[#allocation4 + $0x68] sm:$0xff] (!%p3526_p3)  ;;  %v460_v21 = vld [vmem:[#allocation4 + $0x70] sm:$0xff] (!%p3526_p3)  ;;  %529 = vst [vmem:[#allocation2 + $0x18] sm:$0xff] (!%p3526_p3), %v3916_v13 }
  0xfd   : > { %v3919_v22 = vpack.c.bf16 (!%p3526_p3), %v459_v20, %v458_v19  ;;  %v461_v23 = vld [vmem:[#allocation4 + $0x78] sm:$0xff] (!%p3526_p3)  ;;  %530 = vst [vmem:[#allocation2 + $0x20] sm:$0xff] (!%p3526_p3), %v3917_v17 }
  0xfe   : > { %531 = vst [vmem:[#allocation2 + $0x28] sm:$0xff] (!%p3526_p3), %v3918_v18  ;;  %v3920_v24 = vpack.c.bf16 (!%p3526_p3), %v461_v23, %v460_v21 }
  0xff   : > { %532 = vst [vmem:[#allocation2 + $0x30] sm:$0xff] %v3919_v22 }
 0x100   : > { %533 = vst [vmem:[#allocation2 + $0x38] sm:$0xff] %v3920_v24 }
 0x101 PF: > { %v4114_v25 = vld [vmem:[%s5268_s10 + $0x4] ss:$8 sps:$4 sm:$0xff]   ;;  %v4118_v27 = vld [vmem:[%s5268_s10] ss:$8 sps:$4 sm:$0xff]   ;;  %v4120_v29 = vld [vmem:[%s5268_s10 + $0x14] ss:$8 sps:$4 sm:$0xff]  }
 0x102   : > { %v4116_v26 = vld [vmem:[%s5268_s10 + $0x304] ss:$8 sps:$4 sm:$0xff]   ;;  %2150 = vmatprep.subr.bf16.mxu1 %v4114_v25  ;;  %v4119_v28 = vld [vmem:[%s5268_s10 + $0x300] ss:$8 sps:$4 sm:$0xff]   ;;  %v4122_v30 = vld [vmem:[%s5268_s10 + $0x314] ss:$8 sps:$4 sm:$0xff]  }
 0x103   : > { %2273 = vmatprep.subr.bf16.mxu0 %v4116_v26  ;;  %2151 = vmatpush1.bf16.msra.mxu1 %v4118_v27  ;;  %v4124_v31 = vld [vmem:[%s5268_s10 + $0x10] ss:$8 sps:$4 sm:$0xff]   ;;  %v4126_v33 = vld [vmem:[%s5268_s10 + $0x24] ss:$8 sps:$4 sm:$0xff]   ;;  %v4130_v35 = vld [vmem:[%s5268_s10 + $0x20] ss:$8 sps:$4 sm:$0xff]  }
 0x104   : > { %2274 = vmatpush1.bf16.msra.mxu0 %v4119_v28  ;;  %2152 = vmatprep.subr.bf16.mxu1 %v4120_v29  ;;  %v4125_v32 = vld [vmem:[%s5268_s10 + $0x310] ss:$8 sps:$4 sm:$0xff]   ;;  %v4128_v34 = vld [vmem:[%s5268_s10 + $0x324] ss:$8 sps:$4 sm:$0xff]   ;;  %v4131_v36 = vld [vmem:[%s5268_s10 + $0x320] ss:$8 sps:$4 sm:$0xff]  }
 0x105   : > { %2275 = vmatprep.subr.bf16.mxu0 %v4122_v30  ;;  %v4132_v37 = vld [vmem:[%s5268_s10 + $0x34] ss:$8 sps:$4 sm:$0xff]   ;;  %v4136_v39 = vld [vmem:[%s5268_s10 + $0x30] ss:$8 sps:$4 sm:$0xff]   ;;  %v4138_v41 = vld [vmem:[%s5268_s10 + $0x44] ss:$8 sps:$4 sm:$0xff]  }
 0x106   : > { %v4134_v38 = vld [vmem:[%s5268_s10 + $0x334] ss:$8 sps:$4 sm:$0xff]   ;;  %v4137_v40 = vld [vmem:[%s5268_s10 + $0x330] ss:$8 sps:$4 sm:$0xff]   ;;  %v4140_v42 = vld [vmem:[%s5268_s10 + $0x344] ss:$8 sps:$4 sm:$0xff]  }
 0x107   : > { %2153 = vmatpush1.bf16.msra.mxu1 %v4124_v31  ;;  %v4142_v43 = vld [vmem:[%s5268_s10 + $0x40] ss:$8 sps:$4 sm:$0xff]   ;;  %v4144_v45 = vld [vmem:[%s5268_s10 + $0x54] ss:$8 sps:$4 sm:$0xff]   ;;  %v4148_v47 = vld [vmem:[%s5268_s10 + $0x50] ss:$8 sps:$4 sm:$0xff]  }
 0x108   : > { %2276 = vmatpush1.bf16.msra.mxu0 %v4125_v32  ;;  %2154 = vmatprep.subr.bf16.mxu1 %v4126_v33  ;;  %v4143_v44 = vld [vmem:[%s5268_s10 + $0x340] ss:$8 sps:$4 sm:$0xff]   ;;  %v4146_v46 = vld [vmem:[%s5268_s10 + $0x354] ss:$8 sps:$4 sm:$0xff]   ;;  %v4149_v48 = vld [vmem:[%s5268_s10 + $0x350] ss:$8 sps:$4 sm:$0xff]  }
 0x109   : > { %2277 = vmatprep.subr.bf16.mxu0 %v4128_v34  ;;  %v4150_v49 = vld [vmem:[%s5268_s10 + $0x64] ss:$8 sps:$4 sm:$0xff]   ;;  %v4154_v51 = vld [vmem:[%s5268_s10 + $0x60] ss:$8 sps:$4 sm:$0xff]   ;;  %v4156_v53 = vld [vmem:[%s5268_s10 + $0x74] ss:$8 sps:$4 sm:$0xff]  }
 0x10a   : > { %v4152_v50 = vld [vmem:[%s5268_s10 + $0x364] ss:$8 sps:$4 sm:$0xff]   ;;  %v4155_v52 = vld [vmem:[%s5268_s10 + $0x360] ss:$8 sps:$4 sm:$0xff]   ;;  %v4158_v54 = vld [vmem:[%s5268_s10 + $0x374] ss:$8 sps:$4 sm:$0xff]  }
 0x10b   : > { %2155 = vmatpush1.bf16.msra.mxu1 %v4130_v35  ;;  %v4160_v55 = vld [vmem:[%s5268_s10 + $0x70] ss:$8 sps:$4 sm:$0xff]   ;;  %v4162_v57 = vld [vmem:[%s5268_s10 + $0x84] ss:$8 sps:$4 sm:$0xff]   ;;  %v4166_v59 = vld [vmem:[%s5268_s10 + $0x80] ss:$8 sps:$4 sm:$0xff]  }
 0x10c   : > { %2278 = vmatpush1.bf16.msra.mxu0 %v4131_v36  ;;  %2156 = vmatprep.subr.bf16.mxu1 %v4132_v37  ;;  %v4161_v56 = vld [vmem:[%s5268_s10 + $0x370] ss:$8 sps:$4 sm:$0xff]   ;;  %v4164_v58 = vld [vmem:[%s5268_s10 + $0x384] ss:$8 sps:$4 sm:$0xff]   ;;  %v4167_v60 = vld [vmem:[%s5268_s10 + $0x380] ss:$8 sps:$4 sm:$0xff]  }
 0x10d   : > { %2279 = vmatprep.subr.bf16.mxu0 %v4134_v38  ;;  %v4168_v61 = vld [vmem:[%s5268_s10 + $0x94] ss:$8 sps:$4 sm:$0xff]   ;;  %v4172_v63 = vld [vmem:[%s5268_s10 + $0x90] ss:$8 sps:$4 sm:$0xff]   ;;  %v4174_v1 = vld [vmem:[%s5268_s10 + $0xa4] ss:$8 sps:$4 sm:$0xff]  }
 0x10e   : > { %v4170_v62 = vld [vmem:[%s5268_s10 + $0x394] ss:$8 sps:$4 sm:$0xff]   ;;  %v4173_v0 = vld [vmem:[%s5268_s10 + $0x390] ss:$8 sps:$4 sm:$0xff]   ;;  %v4176_v2 = vld [vmem:[%s5268_s10 + $0x3a4] ss:$8 sps:$4 sm:$0xff]  }
 0x10f   : > { %2157 = vmatpush1.bf16.msra.mxu1 %v4136_v39  ;;  %v4178_v3 = vld [vmem:[%s5268_s10 + $0xa0] ss:$8 sps:$4 sm:$0xff]   ;;  %v4180_v5 = vld [vmem:[%s5268_s10 + $0xb4] ss:$8 sps:$4 sm:$0xff]   ;;  %v4184_v8 = vld [vmem:[%s5268_s10 + $0xb0] ss:$8 sps:$4 sm:$0xff]  }
 0x110   : > { %2280 = vmatpush1.bf16.msra.mxu0 %v4137_v40  ;;  %2158 = vmatprep.subr.bf16.mxu1 %v4138_v41  ;;  %v4179_v4 = vld [vmem:[%s5268_s10 + $0x3a0] ss:$8 sps:$4 sm:$0xff]   ;;  %v4182_v6 = vld [vmem:[%s5268_s10 + $0x3b4] ss:$8 sps:$4 sm:$0xff]   ;;  %v4185_v10 = vld [vmem:[%s5268_s10 + $0x3b0] ss:$8 sps:$4 sm:$0xff]  }
 0x111   : > { %2281 = vmatprep.subr.bf16.mxu0 %v4140_v42  ;;  %v538_v7 = vld [vmem:[#allocation2] sm:$0xff]  ;;  %v541_v11 = vld [vmem:[#allocation2 + $0x18] sm:$0xff]  ;;  %s5766_s18 = sld [smem:[#allocation24_spill]] }
 0x112   : > { %v3536_v9 = vcombine.high %v538_v7, %v538_v7  ;;  %v4186_v12 = vld [vmem:[%s5268_s10 + $0xc4] ss:$8 sps:$4 sm:$0xff]   ;;  %v3542_v14 = vcombine.high %v541_v11, %v541_v11  ;;  %v4190_v15 = vld [vmem:[%s5268_s10 + $0xc0] ss:$8 sps:$4 sm:$0xff]   ;;  %v4192_v17 = vld [vmem:[%s5268_s10 + $0xd4] ss:$8 sps:$4 sm:$0xff]   ;;  %v3535_v31 = vcombine.low %v538_v7, %v538_v7  ;;  %v3541_v32 = vcombine.low %v541_v11, %v541_v11 }
 0x113   : > { %2159 = vmatpush1.bf16.msra.mxu1 %v4142_v43  ;;  %v4188_v13 = vld [vmem:[%s5268_s10 + $0x3c4] ss:$8 sps:$4 sm:$0xff]   ;;  %v4191_v16 = vld [vmem:[%s5268_s10 + $0x3c0] ss:$8 sps:$4 sm:$0xff]   ;;  %v4194_v18 = vld [vmem:[%s5268_s10 + $0x3d4] ss:$8 sps:$4 sm:$0xff]  }
 0x114   : > { %2282 = vmatpush1.bf16.msra.mxu0 %v4143_v44  ;;  %2160 = vmatprep.subr.bf16.mxu1 %v4144_v45  ;;  %v4196_v19 = vld [vmem:[%s5268_s10 + $0xd0] ss:$8 sps:$4 sm:$0xff]   ;;  %v4198_v21 = vld [vmem:[%s5268_s10 + $0xe4] ss:$8 sps:$4 sm:$0xff]   ;;  %v4202_v23 = vld [vmem:[%s5268_s10 + $0xe0] ss:$8 sps:$4 sm:$0xff]  }
 0x115   : > { %2283 = vmatprep.subr.bf16.mxu0 %v4146_v46  ;;  %2182 = vmatprep.mubr.bf16.mxu1 %v3536_v9  ;;  %v4197_v20 = vld [vmem:[%s5268_s10 + $0x3d0] ss:$8 sps:$4 sm:$0xff]   ;;  %v4200_v22 = vld [vmem:[%s5268_s10 + $0x3e4] ss:$8 sps:$4 sm:$0xff]   ;;  %v4203_v24 = vld [vmem:[%s5268_s10 + $0x3e0] ss:$8 sps:$4 sm:$0xff]  }
 0x116   : > { %2305 = vmatprep.mubr.bf16.mxu0 %v3542_v14  ;;  %v4204_v25 = vld [vmem:[%s5268_s10 + $0xf4] ss:$8 sps:$4 sm:$0xff]   ;;  %v4208_v27 = vld [vmem:[%s5268_s10 + $0xf0] ss:$8 sps:$4 sm:$0xff]   ;;  %v4214_v29 = vld [vmem:[%s5268_s10 + $0x104] ss:$8 sps:$4 sm:$0xff]  }
 0x117   : > { %2161 = vmatpush1.bf16.msra.mxu1 %v4148_v47  ;;  %v4206_v26 = vld [vmem:[%s5268_s10 + $0x3f4] ss:$8 sps:$4 sm:$0xff]   ;;  %v4209_v28 = vld [vmem:[%s5268_s10 + $0x3f0] ss:$8 sps:$4 sm:$0xff]   ;;  %v4219_v30 = vld [vmem:[%s5268_s10 + $0x404] ss:$8 sps:$4 sm:$0xff]  }
 0x118   : > { %2284 = vmatpush1.bf16.msra.mxu0 %v4149_v48  ;;  %2162 = vmatprep.subr.bf16.mxu1 %v4150_v49  ;;  %v4212_v33 = vld [vmem:[%s5268_s10 + $0x100] ss:$8 sps:$4 sm:$0xff]   ;;  %v4222_v35 = vld [vmem:[%s5268_s10 + $0x114] ss:$8 sps:$4 sm:$0xff]   ;;  %v4220_v37 = vld [vmem:[%s5268_s10 + $0x110] ss:$8 sps:$4 sm:$0xff]  }
 0x119   : > { %2285 = vmatprep.subr.bf16.mxu0 %v4152_v50  ;;  %v4217_v34 = vld [vmem:[%s5268_s10 + $0x400] ss:$8 sps:$4 sm:$0xff]   ;;  %v4225_v36 = vld [vmem:[%s5268_s10 + $0x414] ss:$8 sps:$4 sm:$0xff]   ;;  %v4223_v38 = vld [vmem:[%s5268_s10 + $0x410] ss:$8 sps:$4 sm:$0xff]  }
 0x11a   : > { %v4228_v39 = vld [vmem:[%s5268_s10 + $0x124] ss:$8 sps:$4 sm:$0xff]   ;;  %v4226_v41 = vld [vmem:[%s5268_s10 + $0x120] ss:$8 sps:$4 sm:$0xff]   ;;  %v4234_v43 = vld [vmem:[%s5268_s10 + $0x134] ss:$8 sps:$4 sm:$0xff]  }
 0x11b   : > { %2163 = vmatpush1.bf16.msra.mxu1 %v4154_v51  ;;  %v4231_v40 = vld [vmem:[%s5268_s10 + $0x424] ss:$8 sps:$4 sm:$0xff]   ;;  %v4229_v42 = vld [vmem:[%s5268_s10 + $0x420] ss:$8 sps:$4 sm:$0xff]   ;;  %v4237_v44 = vld [vmem:[%s5268_s10 + $0x434] ss:$8 sps:$4 sm:$0xff]  }
 0x11c   : > { %2286 = vmatpush1.bf16.msra.mxu0 %v4155_v52  ;;  %2164 = vmatprep.subr.bf16.mxu1 %v4156_v53  ;;  %v4232_v45 = vld [vmem:[%s5268_s10 + $0x130] ss:$8 sps:$4 sm:$0xff]   ;;  %v4240_v47 = vld [vmem:[%s5268_s10 + $0x144] ss:$8 sps:$4 sm:$0xff]   ;;  %v4238_v49 = vld [vmem:[%s5268_s10 + $0x140] ss:$8 sps:$4 sm:$0xff]  }
 0x11d   : > { %2287 = vmatprep.subr.bf16.mxu0 %v4158_v54  ;;  %v4235_v46 = vld [vmem:[%s5268_s10 + $0x430] ss:$8 sps:$4 sm:$0xff]   ;;  %v4243_v48 = vld [vmem:[%s5268_s10 + $0x444] ss:$8 sps:$4 sm:$0xff]   ;;  %v4241_v50 = vld [vmem:[%s5268_s10 + $0x440] ss:$8 sps:$4 sm:$0xff]  }
 0x11e   : > { %v4246_v51 = vld [vmem:[%s5268_s10 + $0x154] ss:$8 sps:$4 sm:$0xff]   ;;  %v4244_v53 = vld [vmem:[%s5268_s10 + $0x150] ss:$8 sps:$4 sm:$0xff]   ;;  %v4276_v11 = vld [vmem:[%s5268_s10 + $0x1a4] ss:$8 sps:$4 sm:$0xff]  }
 0x11f   : > { %2165 = vmatpush1.bf16.msra.mxu1 %v4160_v55  ;;  %v4249_v52 = vld [vmem:[%s5268_s10 + $0x454] ss:$8 sps:$4 sm:$0xff]   ;;  %v4247_v54 = vld [vmem:[%s5268_s10 + $0x450] ss:$8 sps:$4 sm:$0xff]   ;;  %v4252_v55 = vld [vmem:[%s5268_s10 + $0x164] ss:$8 sps:$4 sm:$0xff]  }
 0x120   : > { %2288 = vmatpush1.bf16.msra.mxu0 %v4161_v56  ;;  %2166 = vmatprep.subr.bf16.mxu1 %v4162_v57  ;;  %v4255_v56 = vld [vmem:[%s5268_s10 + $0x464] ss:$8 sps:$4 sm:$0xff]   ;;  %v4270_v7 = vld [vmem:[%s5268_s10 + $0x194] ss:$8 sps:$4 sm:$0xff]   ;;  %v4268_v9 = vld [vmem:[%s5268_s10 + $0x190] ss:$8 sps:$4 sm:$0xff]  }
 0x121   : > { %2289 = vmatprep.subr.bf16.mxu0 %v4164_v58  ;;  %v5381_v57 = vld [vmem:[#allocation2 + $0x8] sm:$0xff]  ;;  %p3871_p7 = scmp.ne.s32.totalorder %s5766_s18, 3 }
 0x122   : > { %v4250_v58 = vld [vmem:[%s5268_s10 + $0x160] ss:$8 sps:$4 sm:$0xff]  }
 0x123   : > { %2167 = vmatpush1.bf16.msra.mxu1 %v4166_v59  ;;  %v4253_v59 = vld [vmem:[%s5268_s10 + $0x460] ss:$8 sps:$4 sm:$0xff]  }
 0x124   : > { %2290 = vmatpush1.bf16.msra.mxu0 %v4167_v60  ;;  %2168 = vmatprep.subr.bf16.mxu1 %v4168_v61  ;;  %v3538_v60 = vcombine.high %v5381_v57, %v5381_v57  ;;  %v5387_v61 = vld [vmem:[#allocation2 + $0x20] sm:$0xff] }
 0x125   : > { %2291 = vmatprep.subr.bf16.mxu0 %v4170_v62  ;;  %v4258_v62 = vld [vmem:[%s5268_s10 + $0x174] ss:$8 sps:$4 sm:$0xff]   ;;  %v4277_v14 = vld [vmem:[%s5268_s10 + $0x4a0] ss:$8 sps:$4 sm:$0xff]  }
 0x127   : > { %2169 = vmatpush1.bf16.msra.mxu1 %v4172_v63  ;;  %v3544_v63 = vcombine.high %v5387_v61, %v5387_v61 }
 0x128   : > { %2292 = vmatpush1.bf16.msra.mxu0 %v4173_v0  ;;  %2170 = vmatprep.subr.bf16.mxu1 %v4174_v1  ;;  %v4261_v0 = vld [vmem:[%s5268_s10 + $0x474] ss:$8 sps:$4 sm:$0xff]   ;;  %v4256_v1 = vld [vmem:[%s5268_s10 + $0x170] ss:$8 sps:$4 sm:$0xff]  }
 0x129   : > { %2293 = vmatprep.subr.bf16.mxu0 %v4176_v2  ;;  %v4259_v2 = vld [vmem:[%s5268_s10 + $0x470] ss:$8 sps:$4 sm:$0xff]  }
 0x12b   : > { %2171 = vmatpush1.bf16.msra.mxu1 %v4178_v3  ;;  %v4264_v3 = vld [vmem:[%s5268_s10 + $0x184] ss:$8 sps:$4 sm:$0xff]  }
 0x12c   : > { %2294 = vmatpush1.bf16.msra.mxu0 %v4179_v4  ;;  %2172 = vmatprep.subr.bf16.mxu1 %v4180_v5  ;;  %v4267_v4 = vld [vmem:[%s5268_s10 + $0x484] ss:$8 sps:$4 sm:$0xff]   ;;  %v4262_v5 = vld [vmem:[%s5268_s10 + $0x180] ss:$8 sps:$4 sm:$0xff]  }
 0x12d   : > { %2295 = vmatprep.subr.bf16.mxu0 %v4182_v6  ;;  %v4265_v6 = vld [vmem:[%s5268_s10 + $0x480] ss:$8 sps:$4 sm:$0xff]  }
 0x12f   : > { %2173 = vmatpush1.bf16.msra.mxu1 %v4184_v8  ;;  %v4273_v8 = vld [vmem:[%s5268_s10 + $0x494] ss:$8 sps:$4 sm:$0xff]  }
 0x130   : > { %2296 = vmatpush1.bf16.msra.mxu0 %v4185_v10  ;;  %2174 = vmatprep.subr.bf16.mxu1 %v4186_v12  ;;  %v4271_v10 = vld [vmem:[%s5268_s10 + $0x490] ss:$8 sps:$4 sm:$0xff]   ;;  %v4279_v12 = vld [vmem:[%s5268_s10 + $0x4a4] ss:$8 sps:$4 sm:$0xff]  }
 0x131   : > { %2297 = vmatprep.subr.bf16.mxu0 %v4188_v13  ;;  %v4274_v13 = vld [vmem:[%s5268_s10 + $0x1a0] ss:$8 sps:$4 sm:$0xff]  }
 0x133   : > { %2175 = vmatpush1.bf16.msra.mxu1 %v4190_v15  ;;  %v4282_v15 = vld [vmem:[%s5268_s10 + $0x1b4] ss:$8 sps:$4 sm:$0xff]  }
 0x134   : > { %2298 = vmatpush1.bf16.msra.mxu0 %v4191_v16  ;;  %2176 = vmatprep.subr.bf16.mxu1 %v4192_v17  ;;  %v4285_v16 = vld [vmem:[%s5268_s10 + $0x4b4] ss:$8 sps:$4 sm:$0xff]   ;;  %v4280_v17 = vld [vmem:[%s5268_s10 + $0x1b0] ss:$8 sps:$4 sm:$0xff]  }
 0x135   : > { %2299 = vmatprep.subr.bf16.mxu0 %v4194_v18  ;;  %v4283_v18 = vld [vmem:[%s5268_s10 + $0x4b0] ss:$8 sps:$4 sm:$0xff]  }
 0x137   : > { %2177 = vmatpush1.bf16.msra.mxu1 %v4196_v19  ;;  %v4288_v19 = vld [vmem:[%s5268_s10 + $0x1c4] ss:$8 sps:$4 sm:$0xff]  }
 0x138   : > { %2300 = vmatpush1.bf16.msra.mxu0 %v4197_v20  ;;  %2178 = vmatprep.subr.bf16.mxu1 %v4198_v21  ;;  %v4291_v20 = vld [vmem:[%s5268_s10 + $0x4c4] ss:$8 sps:$4 sm:$0xff]   ;;  %v4286_v21 = vld [vmem:[%s5268_s10 + $0x1c0] ss:$8 sps:$4 sm:$0xff]  }
 0x139   : > { %2301 = vmatprep.subr.bf16.mxu0 %v4200_v22  ;;  %v4289_v22 = vld [vmem:[%s5268_s10 + $0x4c0] ss:$8 sps:$4 sm:$0xff]  }
 0x13b   : > { %2179 = vmatpush1.bf16.msra.mxu1 %v4202_v23  ;;  %v4294_v23 = vld [vmem:[%s5268_s10 + $0x1d4] ss:$8 sps:$4 sm:$0xff]  }
 0x13c   : > { %2302 = vmatpush1.bf16.msra.mxu0 %v4203_v24  ;;  %2180 = vmatprep.subr.bf16.mxu1 %v4204_v25  ;;  %v4297_v24 = vld [vmem:[%s5268_s10 + $0x4d4] ss:$8 sps:$4 sm:$0xff]   ;;  %v4292_v25 = vld [vmem:[%s5268_s10 + $0x1d0] ss:$8 sps:$4 sm:$0xff]  }
 0x13d   : > { %2303 = vmatprep.subr.bf16.mxu0 %v4206_v26  ;;  %v4295_v26 = vld [vmem:[%s5268_s10 + $0x4d0] ss:$8 sps:$4 sm:$0xff]  }
 0x13f   : > { %2181 = vmatpush1.bf16.msra.mxu1 %v4208_v27  ;;  %v4300_v27 = vld [vmem:[%s5268_s10 + $0x1e4] ss:$8 sps:$4 sm:$0xff]  }
 0x140   : > { %2304 = vmatpush1.bf16.msra.mxu0 %v4209_v28  ;;  %2191 = vmatprep.subr.bf16.mxu1 %v4214_v29  ;;  %v4303_v28 = vld [vmem:[%s5268_s10 + $0x4e4] ss:$8 sps:$4 sm:$0xff]   ;;  %v4298_v29 = vld [vmem:[%s5268_s10 + $0x1e0] ss:$8 sps:$4 sm:$0xff]  }
 0x141   : > { %2314 = vmatprep.subr.bf16.mxu0 %v4219_v30  ;;  %v4301_v30 = vld [vmem:[%s5268_s10 + $0x4e0] ss:$8 sps:$4 sm:$0xff]  }
 0x142   : > { %2183 = vmatmul.mubr.bf16.vlgmr.msra.gmra.mrb[0].mxu1 %v3535_v31  ;;  %v4306_v31 = vld [vmem:[%s5268_s10 + $0x1f4] ss:$8 sps:$4 sm:$0xff]  }
 0x143   : > { %2306 = vmatmul.mubr.bf16.vlgmr.msra.gmra.mrb[0].mxu0 %v3541_v32  ;;  %2192 = vmatpush1.bf16.msra.mxu1 %v4212_v33  ;;  %v4309_v32 = vld [vmem:[%s5268_s10 + $0x4f4] ss:$8 sps:$4 sm:$0xff]   ;;  %v4304_v33 = vld [vmem:[%s5268_s10 + $0x1f0] ss:$8 sps:$4 sm:$0xff]  }
 0x144   : > { %2315 = vmatpush1.bf16.msra.mxu0 %v4217_v34  ;;  %2193 = vmatprep.subr.bf16.mxu1 %v4222_v35  ;;  %v4307_v34 = vld [vmem:[%s5268_s10 + $0x4f0] ss:$8 sps:$4 sm:$0xff]   ;;  %v4314_v35 = vld [vmem:[%s5268_s10 + $0x204] ss:$8 sps:$4 sm:$0xff]  }
 0x145   : > { %2316 = vmatprep.subr.bf16.mxu0 %v4225_v36  ;;  %2223 = vmatprep.mubr.bf16.mxu1 %v3538_v60  ;;  %v4319_v36 = vld [vmem:[%s5268_s10 + $0x504] ss:$8 sps:$4 sm:$0xff]   ;;  %v4341_v60 = vld [vmem:[%s5268_s10 + $0x540] ss:$8 sps:$4 sm:$0xff]  }
 0x146   : > { %2346 = vmatprep.mubr.bf16.mxu0 %v3544_v63  ;;  %v4344_v63 = vld [vmem:[%s5268_s10 + $0x250] ss:$8 sps:$4 sm:$0xff]  }
 0x147   : > { %2194 = vmatpush1.bf16.msra.mxu1 %v4220_v37  ;;  %v3537_v37 = vcombine.low %v5381_v57, %v5381_v57  ;;  %v4340_v57 = vld [vmem:[%s5268_s10 + $0x244] ss:$8 sps:$4 sm:$0xff]  }
 0x148   : > { %2317 = vmatpush1.bf16.msra.mxu0 %v4223_v38  ;;  %2195 = vmatprep.subr.bf16.mxu1 %v4228_v39  ;;  %v4312_v38 = vld [vmem:[%s5268_s10 + $0x200] ss:$8 sps:$4 sm:$0xff]   ;;  %v3543_v39 = vcombine.low %v5387_v61, %v5387_v61  ;;  %v4346_v61 = vld [vmem:[%s5268_s10 + $0x254] ss:$8 sps:$4 sm:$0xff]  }
 0x149   : > { %2318 = vmatprep.subr.bf16.mxu0 %v4231_v40  ;;  %v4317_v40 = vld [vmem:[%s5268_s10 + $0x500] ss:$8 sps:$4 sm:$0xff]  }
 0x14b   : > { %2196 = vmatpush1.bf16.msra.mxu1 %v4226_v41  ;;  %v4322_v41 = vld [vmem:[%s5268_s10 + $0x214] ss:$8 sps:$4 sm:$0xff]  }
 0x14c   : > { %2319 = vmatpush1.bf16.msra.mxu0 %v4229_v42  ;;  %2197 = vmatprep.subr.bf16.mxu1 %v4234_v43  ;;  %v4325_v42 = vld [vmem:[%s5268_s10 + $0x514] ss:$8 sps:$4 sm:$0xff]  }
 0x14d   : > { %2320 = vmatprep.subr.bf16.mxu0 %v4237_v44  ;;  %v5437_v43 = vld [vmem:[#allocation2 + $0x10] sm:$0xff]  ;;  %v5439_v44 = vld [vmem:[#allocation2 + $0x28] sm:$0xff] }
 0x14f   : > { %2198 = vmatpush1.bf16.msra.mxu1 %v4232_v45  ;;  %v3540_v45 = vcombine.high %v5437_v43, %v5437_v43 }
 0x150   : > { %2321 = vmatpush1.bf16.msra.mxu0 %v4235_v46  ;;  %2199 = vmatprep.subr.bf16.mxu1 %v4240_v47  ;;  %v3546_v46 = vcombine.high %v5439_v44, %v5439_v44  ;;  %v4320_v47 = vld [vmem:[%s5268_s10 + $0x210] ss:$8 sps:$4 sm:$0xff]  }
 0x151   : > { %2322 = vmatprep.subr.bf16.mxu0 %v4243_v48  ;;  %v4323_v48 = vld [vmem:[%s5268_s10 + $0x510] ss:$8 sps:$4 sm:$0xff]  }
 0x153   : > { %2200 = vmatpush1.bf16.msra.mxu1 %v4238_v49  ;;  %v4328_v49 = vld [vmem:[%s5268_s10 + $0x224] ss:$8 sps:$4 sm:$0xff]  }
 0x154   : > { %2323 = vmatpush1.bf16.msra.mxu0 %v4241_v50  ;;  %2201 = vmatprep.subr.bf16.mxu1 %v4246_v51  ;;  %v4331_v50 = vld [vmem:[%s5268_s10 + $0x524] ss:$8 sps:$4 sm:$0xff]   ;;  %v4326_v51 = vld [vmem:[%s5268_s10 + $0x220] ss:$8 sps:$4 sm:$0xff]  }
 0x155   : > { %2324 = vmatprep.subr.bf16.mxu0 %v4249_v52  ;;  %v4329_v52 = vld [vmem:[%s5268_s10 + $0x520] ss:$8 sps:$4 sm:$0xff]  }
 0x157   : > { %2202 = vmatpush1.bf16.msra.mxu1 %v4244_v53  ;;  %v4334_v53 = vld [vmem:[%s5268_s10 + $0x234] ss:$8 sps:$4 sm:$0xff]  }
 0x158   : > { %2325 = vmatpush1.bf16.msra.mxu0 %v4247_v54  ;;  %2203 = vmatprep.subr.bf16.mxu1 %v4252_v55  ;;  %v4337_v54 = vld [vmem:[%s5268_s10 + $0x534] ss:$8 sps:$4 sm:$0xff]   ;;  %v4332_v55 = vld [vmem:[%s5268_s10 + $0x230] ss:$8 sps:$4 sm:$0xff]  }
 0x159   : > { %2326 = vmatprep.subr.bf16.mxu0 %v4255_v56  ;;  %v4335_v56 = vld [vmem:[%s5268_s10 + $0x530] ss:$8 sps:$4 sm:$0xff]  }
 0x15b   : > { %2204 = vmatpush1.bf16.msra.mxu1 %v4250_v58  ;;  %v4343_v58 = vld [vmem:[%s5268_s10 + $0x544] ss:$8 sps:$4 sm:$0xff]  }
 0x15c   : > { %2327 = vmatpush1.bf16.msra.mxu0 %v4253_v59  ;;  %2205 = vmatprep.subr.bf16.mxu1 %v4258_v62  ;;  %v4338_v59 = vld [vmem:[%s5268_s10 + $0x240] ss:$8 sps:$4 sm:$0xff]   ;;  %v4349_v62 = vld [vmem:[%s5268_s10 + $0x554] ss:$8 sps:$4 sm:$0xff]  }
 0x15d   : > { %2328 = vmatprep.subr.bf16.mxu0 %v4261_v0  ;;  %v4347_v0 = vld [vmem:[%s5268_s10 + $0x550] ss:$8 sps:$4 sm:$0xff]  }
 0x15f   : > { %2206 = vmatpush1.bf16.msra.mxu1 %v4256_v1  ;;  %v4352_v1 = vld [vmem:[%s5268_s10 + $0x264] ss:$8 sps:$4 sm:$0xff]  }
 0x160   : > { %2329 = vmatpush1.bf16.msra.mxu0 %v4259_v2  ;;  %2207 = vmatprep.subr.bf16.mxu1 %v4264_v3  ;;  %v4355_v2 = vld [vmem:[%s5268_s10 + $0x564] ss:$8 sps:$4 sm:$0xff]   ;;  %v4350_v3 = vld [vmem:[%s5268_s10 + $0x260] ss:$8 sps:$4 sm:$0xff]  }
 0x161   : > { %2330 = vmatprep.subr.bf16.mxu0 %v4267_v4  ;;  %v4353_v4 = vld [vmem:[%s5268_s10 + $0x560] ss:$8 sps:$4 sm:$0xff]  }
 0x163   : > { %2208 = vmatpush1.bf16.msra.mxu1 %v4262_v5  ;;  %v4358_v5 = vld [vmem:[%s5268_s10 + $0x274] ss:$8 sps:$4 sm:$0xff]  }
 0x164   : > { %2331 = vmatpush1.bf16.msra.mxu0 %v4265_v6  ;;  %2209 = vmatprep.subr.bf16.mxu1 %v4270_v7  ;;  %v4361_v6 = vld [vmem:[%s5268_s10 + $0x574] ss:$8 sps:$4 sm:$0xff]   ;;  %v4356_v7 = vld [vmem:[%s5268_s10 + $0x270] ss:$8 sps:$4 sm:$0xff]  }
 0x165   : > { %2332 = vmatprep.subr.bf16.mxu0 %v4273_v8  ;;  %v4359_v8 = vld [vmem:[%s5268_s10 + $0x570] ss:$8 sps:$4 sm:$0xff]  }
 0x167   : > { %2210 = vmatpush1.bf16.msra.mxu1 %v4268_v9  ;;  %v4364_v9 = vld [vmem:[%s5268_s10 + $0x284] ss:$8 sps:$4 sm:$0xff]  }
 0x168   : > { %2333 = vmatpush1.bf16.msra.mxu0 %v4271_v10  ;;  %2211 = vmatprep.subr.bf16.mxu1 %v4276_v11  ;;  %v4367_v10 = vld [vmem:[%s5268_s10 + $0x584] ss:$8 sps:$4 sm:$0xff]   ;;  %v4362_v11 = vld [vmem:[%s5268_s10 + $0x280] ss:$8 sps:$4 sm:$0xff]  }
 0x169   : > { %2334 = vmatprep.subr.bf16.mxu0 %v4279_v12  ;;  %v4365_v12 = vld [vmem:[%s5268_s10 + $0x580] ss:$8 sps:$4 sm:$0xff]  }
 0x16b   : > { %2212 = vmatpush1.bf16.msra.mxu1 %v4274_v13  ;;  %v4370_v13 = vld [vmem:[%s5268_s10 + $0x294] ss:$8 sps:$4 sm:$0xff]  }
 0x16c   : > { %2335 = vmatpush1.bf16.msra.mxu0 %v4277_v14  ;;  %2213 = vmatprep.subr.bf16.mxu1 %v4282_v15  ;;  %v4373_v14 = vld [vmem:[%s5268_s10 + $0x594] ss:$8 sps:$4 sm:$0xff]   ;;  %v4368_v15 = vld [vmem:[%s5268_s10 + $0x290] ss:$8 sps:$4 sm:$0xff]  }
 0x16d   : > { %2336 = vmatprep.subr.bf16.mxu0 %v4285_v16  ;;  %v4371_v16 = vld [vmem:[%s5268_s10 + $0x590] ss:$8 sps:$4 sm:$0xff]  }
 0x16f   : > { %2214 = vmatpush1.bf16.msra.mxu1 %v4280_v17  ;;  %v4376_v17 = vld [vmem:[%s5268_s10 + $0x2a4] ss:$8 sps:$4 sm:$0xff]  }
 0x170   : > { %2337 = vmatpush1.bf16.msra.mxu0 %v4283_v18  ;;  %2215 = vmatprep.subr.bf16.mxu1 %v4288_v19  ;;  %v4379_v18 = vld [vmem:[%s5268_s10 + $0x5a4] ss:$8 sps:$4 sm:$0xff]   ;;  %v4374_v19 = vld [vmem:[%s5268_s10 + $0x2a0] ss:$8 sps:$4 sm:$0xff]  }
 0x171   : > { %2338 = vmatprep.subr.bf16.mxu0 %v4291_v20  ;;  %v4377_v20 = vld [vmem:[%s5268_s10 + $0x5a0] ss:$8 sps:$4 sm:$0xff]  }
 0x173   : > { %2216 = vmatpush1.bf16.msra.mxu1 %v4286_v21  ;;  %v4382_v21 = vld [vmem:[%s5268_s10 + $0x2b4] ss:$8 sps:$4 sm:$0xff]  }
 0x174   : > { %2339 = vmatpush1.bf16.msra.mxu0 %v4289_v22  ;;  %2217 = vmatprep.subr.bf16.mxu1 %v4294_v23  ;;  %v4385_v22 = vld [vmem:[%s5268_s10 + $0x5b4] ss:$8 sps:$4 sm:$0xff]   ;;  %v4380_v23 = vld [vmem:[%s5268_s10 + $0x2b0] ss:$8 sps:$4 sm:$0xff]  }
 0x175   : > { %2340 = vmatprep.subr.bf16.mxu0 %v4297_v24  ;;  %v4383_v24 = vld [vmem:[%s5268_s10 + $0x5b0] ss:$8 sps:$4 sm:$0xff]  }
 0x177   : > { %2218 = vmatpush1.bf16.msra.mxu1 %v4292_v25  ;;  %v4388_v25 = vld [vmem:[%s5268_s10 + $0x2c4] ss:$8 sps:$4 sm:$0xff]  }
 0x178   : > { %2341 = vmatpush1.bf16.msra.mxu0 %v4295_v26  ;;  %2219 = vmatprep.subr.bf16.mxu1 %v4300_v27  ;;  %v4391_v26 = vld [vmem:[%s5268_s10 + $0x5c4] ss:$8 sps:$4 sm:$0xff]   ;;  %v4386_v27 = vld [vmem:[%s5268_s10 + $0x2c0] ss:$8 sps:$4 sm:$0xff]  }
 0x179   : > { %2342 = vmatprep.subr.bf16.mxu0 %v4303_v28  ;;  %v4389_v28 = vld [vmem:[%s5268_s10 + $0x5c0] ss:$8 sps:$4 sm:$0xff]  }
 0x17b   : > { %2220 = vmatpush1.bf16.msra.mxu1 %v4298_v29  ;;  %v4394_v29 = vld [vmem:[%s5268_s10 + $0x2d4] ss:$8 sps:$4 sm:$0xff]  }
 0x17c   : > { %2343 = vmatpush1.bf16.msra.mxu0 %v4301_v30  ;;  %2221 = vmatprep.subr.bf16.mxu1 %v4306_v31  ;;  %v4397_v30 = vld [vmem:[%s5268_s10 + $0x5d4] ss:$8 sps:$4 sm:$0xff]   ;;  %v4392_v31 = vld [vmem:[%s5268_s10 + $0x2d0] ss:$8 sps:$4 sm:$0xff]  }
 0x17d   : > { %2344 = vmatprep.subr.bf16.mxu0 %v4309_v32  ;;  %v4395_v32 = vld [vmem:[%s5268_s10 + $0x5d0] ss:$8 sps:$4 sm:$0xff]  }
 0x17f   : > { %2222 = vmatpush1.bf16.msra.mxu1 %v4304_v33  ;;  %v4400_v33 = vld [vmem:[%s5268_s10 + $0x2e4] ss:$8 sps:$4 sm:$0xff]  }
 0x180   : > { %2345 = vmatpush1.bf16.msra.mxu0 %v4307_v34  ;;  %2232 = vmatprep.subr.bf16.mxu1 %v4314_v35  ;;  %v4403_v34 = vld [vmem:[%s5268_s10 + $0x5e4] ss:$8 sps:$4 sm:$0xff]   ;;  %v4398_v35 = vld [vmem:[%s5268_s10 + $0x2e0] ss:$8 sps:$4 sm:$0xff]  }
 0x181   : > { %2355 = vmatprep.subr.bf16.mxu0 %v4319_v36  ;;  %v4401_v36 = vld [vmem:[%s5268_s10 + $0x5e0] ss:$8 sps:$4 sm:$0xff]  }
 0x182   : > { %2224 = vmatmul.mubr.bf16.vlgmr.msra.gmra.mrb[0].mxu1 %v3537_v37  ;;  %v4406_v37 = vld [vmem:[%s5268_s10 + $0x2f4] ss:$8 sps:$4 sm:$0xff]  }
 0x183   : > { %2347 = vmatmul.mubr.bf16.vlgmr.msra.gmra.mrb[0].mxu0 %v3543_v39  ;;  %2233 = vmatpush1.bf16.msra.mxu1 %v4312_v38  ;;  %v4409_v38 = vld [vmem:[%s5268_s10 + $0x5f4] ss:$8 sps:$4 sm:$0xff]   ;;  %v4404_v39 = vld [vmem:[%s5268_s10 + $0x2f0] ss:$8 sps:$4 sm:$0xff]  }
 0x184   : > { %2356 = vmatpush1.bf16.msra.mxu0 %v4317_v40  ;;  %2234 = vmatprep.subr.bf16.mxu1 %v4322_v41  ;;  %v4407_v40 = vld [vmem:[%s5268_s10 + $0x5f0] ss:$8 sps:$4 sm:$0xff]   ;;  %v4416_v41 = vld [vmem:[%s5268_s10 + $0x604] ss:$8 sps:$4 sm:$0xff]  }
 0x185   : > { %2357 = vmatprep.subr.bf16.mxu0 %v4325_v42  ;;  %2264 = vmatprep.mubr.bf16.mxu1 %v3540_v45  ;;  %v5504_v42 = vld [vmem:[#allocation2 + $0x30] sm:$0xff]  ;;  %v4414_v45 = vld [vmem:[%s5268_s10 + $0x600] ss:$8 sps:$4 sm:$0xff]  }
 0x186   : > { %2387 = vmatprep.mubr.bf16.mxu0 %v3546_v46  ;;  %v3539_v46 = vcombine.low %v5437_v43, %v5437_v43  ;;  %v4422_v43 = vld [vmem:[%s5268_s10 + $0x624] ss:$8 sps:$4 sm:$0xff]  }
 0x187   : > { %2235 = vmatpush1.bf16.msra.mxu1 %v4320_v47  ;;  %v3545_v47 = vcombine.low %v5439_v44, %v5439_v44  ;;  %v4420_v44 = vld [vmem:[%s5268_s10 + $0x620] ss:$8 sps:$4 sm:$0xff]  }
 0x188   : > { %2358 = vmatpush1.bf16.msra.mxu0 %v4323_v48  ;;  %2236 = vmatprep.subr.bf16.mxu1 %v4328_v49  ;;  %v4419_v48 = vld [vmem:[%s5268_s10 + $0x614] ss:$8 sps:$4 sm:$0xff]   ;;  %v3548_v49 = vcombine.high %v5504_v42, %v5504_v42 }
 0x189   : > { %2359 = vmatprep.subr.bf16.mxu0 %v4331_v50  ;;  %v4417_v50 = vld [vmem:[%s5268_s10 + $0x610] ss:$8 sps:$4 sm:$0xff]  }
 0x18b   : > { %2237 = vmatpush1.bf16.msra.mxu1 %v4326_v51  ;;  %v4425_v51 = vld [vmem:[%s5268_s10 + $0x634] ss:$8 sps:$4 sm:$0xff]  }
 0x18c   : > { %2360 = vmatpush1.bf16.msra.mxu0 %v4329_v52  ;;  %2238 = vmatprep.subr.bf16.mxu1 %v4334_v53  ;;  %v4423_v52 = vld [vmem:[%s5268_s10 + $0x630] ss:$8 sps:$4 sm:$0xff]   ;;  %v4428_v53 = vld [vmem:[%s5268_s10 + $0x644] ss:$8 sps:$4 sm:$0xff]  }
 0x18d   : > { %2361 = vmatprep.subr.bf16.mxu0 %v4337_v54  ;;  %v4426_v54 = vld [vmem:[%s5268_s10 + $0x640] ss:$8 sps:$4 sm:$0xff]  }
 0x18f   : > { %2239 = vmatpush1.bf16.msra.mxu1 %v4332_v55  ;;  %v4431_v55 = vld [vmem:[%s5268_s10 + $0x654] ss:$8 sps:$4 sm:$0xff]  }
 0x190   : > { %2362 = vmatpush1.bf16.msra.mxu0 %v4335_v56  ;;  %2240 = vmatprep.subr.bf16.mxu1 %v4340_v57  ;;  %v4429_v56 = vld [vmem:[%s5268_s10 + $0x650] ss:$8 sps:$4 sm:$0xff]   ;;  %v4434_v57 = vld [vmem:[%s5268_s10 + $0x664] ss:$8 sps:$4 sm:$0xff]  }
 0x191   : > { %2363 = vmatprep.subr.bf16.mxu0 %v4343_v58  ;;  %v4432_v58 = vld [vmem:[%s5268_s10 + $0x660] ss:$8 sps:$4 sm:$0xff]  }
 0x193   : > { %2241 = vmatpush1.bf16.msra.mxu1 %v4338_v59  ;;  %v4437_v59 = vld [vmem:[%s5268_s10 + $0x674] ss:$8 sps:$4 sm:$0xff]  }
 0x194   : > { %2364 = vmatpush1.bf16.msra.mxu0 %v4341_v60  ;;  %2242 = vmatprep.subr.bf16.mxu1 %v4346_v61  ;;  %v4435_v60 = vld [vmem:[%s5268_s10 + $0x670] ss:$8 sps:$4 sm:$0xff]   ;;  %v4440_v61 = vld [vmem:[%s5268_s10 + $0x684] ss:$8 sps:$4 sm:$0xff]  }
 0x195   : > { %2365 = vmatprep.subr.bf16.mxu0 %v4349_v62  ;;  %v4438_v62 = vld [vmem:[%s5268_s10 + $0x680] ss:$8 sps:$4 sm:$0xff]  }
 0x197   : > { %2243 = vmatpush1.bf16.msra.mxu1 %v4344_v63  ;;  %v4443_v63 = vld [vmem:[%s5268_s10 + $0x694] ss:$8 sps:$4 sm:$0xff]  }
 0x198   : > { %2366 = vmatpush1.bf16.msra.mxu0 %v4347_v0  ;;  %2244 = vmatprep.subr.bf16.mxu1 %v4352_v1  ;;  %v4441_v0 = vld [vmem:[%s5268_s10 + $0x690] ss:$8 sps:$4 sm:$0xff]   ;;  %v4446_v1 = vld [vmem:[%s5268_s10 + $0x6a4] ss:$8 sps:$4 sm:$0xff]  }
 0x199   : > { %2367 = vmatprep.subr.bf16.mxu0 %v4355_v2  ;;  %v4444_v2 = vld [vmem:[%s5268_s10 + $0x6a0] ss:$8 sps:$4 sm:$0xff]  }
 0x19b   : > { %2245 = vmatpush1.bf16.msra.mxu1 %v4350_v3  ;;  %v4449_v3 = vld [vmem:[%s5268_s10 + $0x6b4] ss:$8 sps:$4 sm:$0xff]  }
 0x19c   : > { %2368 = vmatpush1.bf16.msra.mxu0 %v4353_v4  ;;  %2246 = vmatprep.subr.bf16.mxu1 %v4358_v5  ;;  %v4447_v4 = vld [vmem:[%s5268_s10 + $0x6b0] ss:$8 sps:$4 sm:$0xff]   ;;  %v4452_v5 = vld [vmem:[%s5268_s10 + $0x6c4] ss:$8 sps:$4 sm:$0xff]  }
 0x19d   : > { %2369 = vmatprep.subr.bf16.mxu0 %v4361_v6  ;;  %v4450_v6 = vld [vmem:[%s5268_s10 + $0x6c0] ss:$8 sps:$4 sm:$0xff]  }
 0x19f   : > { %2247 = vmatpush1.bf16.msra.mxu1 %v4356_v7  ;;  %v4455_v7 = vld [vmem:[%s5268_s10 + $0x6d4] ss:$8 sps:$4 sm:$0xff]  }
 0x1a0   : > { %2370 = vmatpush1.bf16.msra.mxu0 %v4359_v8  ;;  %2248 = vmatprep.subr.bf16.mxu1 %v4364_v9  ;;  %v4453_v8 = vld [vmem:[%s5268_s10 + $0x6d0] ss:$8 sps:$4 sm:$0xff]   ;;  %v4458_v9 = vld [vmem:[%s5268_s10 + $0x6e4] ss:$8 sps:$4 sm:$0xff]  }
 0x1a1   : > { %2371 = vmatprep.subr.bf16.mxu0 %v4367_v10  ;;  %v4456_v10 = vld [vmem:[%s5268_s10 + $0x6e0] ss:$8 sps:$4 sm:$0xff]  }
 0x1a3   : > { %2249 = vmatpush1.bf16.msra.mxu1 %v4362_v11  ;;  %v4461_v11 = vld [vmem:[%s5268_s10 + $0x6f4] ss:$8 sps:$4 sm:$0xff]  }
 0x1a4   : > { %2372 = vmatpush1.bf16.msra.mxu0 %v4365_v12  ;;  %2250 = vmatprep.subr.bf16.mxu1 %v4370_v13  ;;  %v4459_v12 = vld [vmem:[%s5268_s10 + $0x6f0] ss:$8 sps:$4 sm:$0xff]   ;;  %v4466_v13 = vld [vmem:[%s5268_s10 + $0x704] ss:$8 sps:$4 sm:$0xff]  }
 0x1a5   : > { %2373 = vmatprep.subr.bf16.mxu0 %v4373_v14  ;;  %v5544_v14 = vld [vmem:[#allocation2 + $0x38] sm:$0xff] }
 0x1a7   : > { %2251 = vmatpush1.bf16.msra.mxu1 %v4368_v15  ;;  %v3547_v15 = vcombine.low %v5504_v42, %v5504_v42  ;;  %v4491_v42 = vld [vmem:[%s5268_s10 + $0x790] ss:$8 sps:$4 sm:$0xff]  }
 0x1a8   : > { %2374 = vmatpush1.bf16.msra.mxu0 %v4371_v16  ;;  %2252 = vmatprep.subr.bf16.mxu1 %v4376_v17  ;;  %v4464_v16 = vld [vmem:[%s5268_s10 + $0x700] ss:$8 sps:$4 sm:$0xff]   ;;  %v3550_v17 = vcombine.high %v5544_v14, %v5544_v14 }
 0x1a9   : > { %2375 = vmatprep.subr.bf16.mxu0 %v4379_v18  ;;  %v4469_v18 = vld [vmem:[%s5268_s10 + $0x714] ss:$8 sps:$4 sm:$0xff]  }
 0x1ab   : > { %2253 = vmatpush1.bf16.msra.mxu1 %v4374_v19  ;;  %v4467_v19 = vld [vmem:[%s5268_s10 + $0x710] ss:$8 sps:$4 sm:$0xff]  }
 0x1ac   : > { %2376 = vmatpush1.bf16.msra.mxu0 %v4377_v20  ;;  %2254 = vmatprep.subr.bf16.mxu1 %v4382_v21  ;;  %v4472_v20 = vld [vmem:[%s5268_s10 + $0x724] ss:$8 sps:$4 sm:$0xff]   ;;  %v4470_v21 = vld [vmem:[%s5268_s10 + $0x720] ss:$8 sps:$4 sm:$0xff]  }
 0x1ad   : > { %2377 = vmatprep.subr.bf16.mxu0 %v4385_v22  ;;  %v4475_v22 = vld [vmem:[%s5268_s10 + $0x734] ss:$8 sps:$4 sm:$0xff]  }
 0x1af   : > { %2255 = vmatpush1.bf16.msra.mxu1 %v4380_v23  ;;  %v4473_v23 = vld [vmem:[%s5268_s10 + $0x730] ss:$8 sps:$4 sm:$0xff]  }
 0x1b0   : > { %2378 = vmatpush1.bf16.msra.mxu0 %v4383_v24  ;;  %2256 = vmatprep.subr.bf16.mxu1 %v4388_v25  ;;  %v4478_v24 = vld [vmem:[%s5268_s10 + $0x744] ss:$8 sps:$4 sm:$0xff]   ;;  %v4476_v25 = vld [vmem:[%s5268_s10 + $0x740] ss:$8 sps:$4 sm:$0xff]  }
 0x1b1   : > { %2379 = vmatprep.subr.bf16.mxu0 %v4391_v26  ;;  %v4481_v26 = vld [vmem:[%s5268_s10 + $0x754] ss:$8 sps:$4 sm:$0xff]  }
 0x1b3   : > { %2257 = vmatpush1.bf16.msra.mxu1 %v4386_v27  ;;  %v4479_v27 = vld [vmem:[%s5268_s10 + $0x750] ss:$8 sps:$4 sm:$0xff]  }
 0x1b4   : > { %2380 = vmatpush1.bf16.msra.mxu0 %v4389_v28  ;;  %2258 = vmatprep.subr.bf16.mxu1 %v4394_v29  ;;  %v4484_v28 = vld [vmem:[%s5268_s10 + $0x764] ss:$8 sps:$4 sm:$0xff]   ;;  %v4482_v29 = vld [vmem:[%s5268_s10 + $0x760] ss:$8 sps:$4 sm:$0xff]  }
 0x1b5   : > { %2381 = vmatprep.subr.bf16.mxu0 %v4397_v30  ;;  %v4487_v30 = vld [vmem:[%s5268_s10 + $0x774] ss:$8 sps:$4 sm:$0xff]  }
 0x1b7   : > { %2259 = vmatpush1.bf16.msra.mxu1 %v4392_v31  ;;  %v4514_v31 = vld [vmem:[%s5276_s21] ss:$16 sps:$4 sm:$0xff]  }
 0x1b8   : > { %2382 = vmatpush1.bf16.msra.mxu0 %v4395_v32  ;;  %2260 = vmatprep.subr.bf16.mxu1 %v4400_v33  ;;  %v4516_v32 = vld [vmem:[%s5276_s21 + $0x4] ss:$16 sps:$4 sm:$0xff]  }
 0x1b9   : > { %2383 = vmatprep.subr.bf16.mxu0 %v4403_v34  ;;  %v4519_v33 = vld [vmem:[%s5276_s21 + $0x24] ss:$16 sps:$4 sm:$0xff]  }
 0x1ba   : > { %v4485_v34 = vld [vmem:[%s5268_s10 + $0x770] ss:$8 sps:$4 sm:$0xff]  }
 0x1bb   : > { %2261 = vmatpush1.bf16.msra.mxu1 %v4398_v35  ;;  %v4517_v35 = vld [vmem:[%s5276_s21 + $0x20] ss:$16 sps:$4 sm:$0xff]  }
 0x1bc   : > { %2384 = vmatpush1.bf16.msra.mxu0 %v4401_v36  ;;  %2262 = vmatprep.subr.bf16.mxu1 %v4406_v37  ;;  %v4490_v36 = vld [vmem:[%s5268_s10 + $0x784] ss:$8 sps:$4 sm:$0xff]   ;;  %v4522_v37 = vld [vmem:[%s5276_s21 + $0x44] ss:$16 sps:$4 sm:$0xff]  }
 0x1bd   : > { %2385 = vmatprep.subr.bf16.mxu0 %v4409_v38  ;;  %v4488_v38 = vld [vmem:[%s5268_s10 + $0x780] ss:$8 sps:$4 sm:$0xff]  }
 0x1bf   : > { %2263 = vmatpush1.bf16.msra.mxu1 %v4404_v39  ;;  %v4520_v39 = vld [vmem:[%s5276_s21 + $0x40] ss:$16 sps:$4 sm:$0xff]  }
 0x1c0   : > { %2386 = vmatpush1.bf16.msra.mxu0 %v4407_v40  ;;  %2870 = vmatprep.subr.bf16.mxu1 %v4516_v32  ;;  %v4493_v40 = vld [vmem:[%s5268_s10 + $0x794] ss:$8 sps:$4 sm:$0xff]  }
 0x1c1   : > { %2396 = vmatprep.subr.bf16.mxu0 %v4416_v41  ;;  %v4525_v41 = vld [vmem:[%s5276_s21 + $0x64] ss:$16 sps:$4 sm:$0xff]  }
 0x1c2   : > { %2265 = vmatmul.mubr.bf16.vlgmr.msra.gmra.mrb[0].mxu1 %v3539_v46  ;;  %v4496_v46 = vld [vmem:[%s5268_s10 + $0x7a4] ss:$8 sps:$4 sm:$0xff]  }
 0x1c3   : > { %2388 = vmatmul.mubr.bf16.vlgmr.msra.gmra.mrb[0].mxu0 %v3545_v47  ;;  %2871 = vmatpush1.bf16.msra.mxu1 %v4514_v31  ;;  %v4528_v47 = vld [vmem:[%s5276_s21 + $0x84] ss:$16 sps:$4 sm:$0xff]  }
 0x1c4   : > { %2397 = vmatpush1.bf16.msra.mxu0 %v4414_v45  ;;  %2428 = vmatprep.mubr.bf16.mxu0 %v3548_v49  ;;  %v4523_v45 = vld [vmem:[%s5276_s21 + $0x60] ss:$16 sps:$4 sm:$0xff]  }
 0x1c5   : > { %2398 = vmatprep.subr.bf16.mxu0 %v4419_v48  ;;  %2872 = vmatprep.subr.bf16.mxu1 %v4519_v33  ;;  %v4494_v48 = vld [vmem:[%s5268_s10 + $0x7a0] ss:$8 sps:$4 sm:$0xff]   ;;  %v4526_v49 = vld [vmem:[%s5276_s21 + $0x80] ss:$16 sps:$4 sm:$0xff]  }
 0x1c7   : > { %2873 = vmatpush1.bf16.msra.mxu1 %v4517_v35 }
 0x1c8   : > { %2399 = vmatpush1.bf16.msra.mxu0 %v4417_v50  ;;  %2874 = vmatprep.subr.bf16.mxu1 %v4522_v37  ;;  %v4499_v50 = vld [vmem:[%s5268_s10 + $0x7b4] ss:$8 sps:$4 sm:$0xff]  }
 0x1c9   : > { %2400 = vmatprep.subr.bf16.mxu0 %v4422_v43  ;;  %v4531_v43 = vld [vmem:[%s5276_s21 + $0xa4] ss:$16 sps:$4 sm:$0xff]  }
 0x1cb   : > { %2875 = vmatpush1.bf16.msra.mxu1 %v4520_v39 }
 0x1cc   : > { %2401 = vmatpush1.bf16.msra.mxu0 %v4420_v44  ;;  %2876 = vmatprep.subr.bf16.mxu1 %v4525_v41  ;;  %v4497_v44 = vld [vmem:[%s5268_s10 + $0x7b0] ss:$8 sps:$4 sm:$0xff]  }
 0x1cd   : > { %2402 = vmatprep.subr.bf16.mxu0 %v4425_v51  ;;  %v4529_v51 = vld [vmem:[%s5276_s21 + $0xa0] ss:$16 sps:$4 sm:$0xff]  }
 0x1cf   : > { %2877 = vmatpush1.bf16.msra.mxu1 %v4523_v45  ;;  %v4565_v45 = vld [vmem:[%s5276_s21 + $0x28] ss:$16 sps:$4 sm:$0xff]  }
 0x1d0   : > { %2403 = vmatpush1.bf16.msra.mxu0 %v4423_v52  ;;  %2878 = vmatprep.subr.bf16.mxu1 %v4528_v47  ;;  %v4502_v52 = vld [vmem:[%s5268_s10 + $0x7c4] ss:$8 sps:$4 sm:$0xff]  }
 0x1d1   : > { %2404 = vmatprep.subr.bf16.mxu0 %v4428_v53  ;;  %v4534_v53 = vld [vmem:[%s5276_s21 + $0xc4] ss:$16 sps:$4 sm:$0xff]   ;;  %v4568_v47 = vld [vmem:[%s5276_s21 + $0x48] ss:$16 sps:$4 sm:$0xff]  }
 0x1d3   : > { %2879 = vmatpush1.bf16.msra.mxu1 %v4526_v49  ;;  %v4571_v49 = vld [vmem:[%s5276_s21 + $0x68] ss:$16 sps:$4 sm:$0xff]  }
 0x1d4   : > { %2405 = vmatpush1.bf16.msra.mxu0 %v4426_v54  ;;  %2880 = vmatprep.subr.bf16.mxu1 %v4531_v43  ;;  %v4500_v54 = vld [vmem:[%s5268_s10 + $0x7c0] ss:$8 sps:$4 sm:$0xff]   ;;  %v4574_v43 = vld [vmem:[%s5276_s21 + $0x88] ss:$16 sps:$4 sm:$0xff]  }
 0x1d5   : > { %2406 = vmatprep.subr.bf16.mxu0 %v4431_v55  ;;  %v4532_v55 = vld [vmem:[%s5276_s21 + $0xc0] ss:$16 sps:$4 sm:$0xff]  }
 0x1d7   : > { %2881 = vmatpush1.bf16.msra.mxu1 %v4529_v51  ;;  %v4577_v51 = vld [vmem:[%s5276_s21 + $0xa8] ss:$16 sps:$4 sm:$0xff]  }
 0x1d8   : > { %2407 = vmatpush1.bf16.msra.mxu0 %v4429_v56  ;;  %v4505_v56 = vld [vmem:[%s5268_s10 + $0x7d4] ss:$8 sps:$4 sm:$0xff]   ;;  %2882 = vmatprep.subr.bf16.mxu1 %v4534_v53 }
 0x1d9   : > { %2408 = vmatprep.subr.bf16.mxu0 %v4434_v57  ;;  %v4537_v57 = vld [vmem:[%s5276_s21 + $0xe4] ss:$16 sps:$4 sm:$0xff]   ;;  %v4580_v53 = vld [vmem:[%s5276_s21 + $0xc8] ss:$16 sps:$4 sm:$0xff]  }
 0x1db   : > { %2883 = vmatpush1.bf16.msra.mxu1 %v4532_v55  ;;  %v4583_v55 = vld [vmem:[%s5276_s21 + $0xe8] ss:$16 sps:$4 sm:$0xff]  }
 0x1dc   : > { %2409 = vmatpush1.bf16.msra.mxu0 %v4432_v58  ;;  %v4503_v58 = vld [vmem:[%s5268_s10 + $0x7d0] ss:$8 sps:$4 sm:$0xff]   ;;  %2884 = vmatprep.subr.bf16.mxu1 %v4537_v57  ;;  %v4586_v57 = vld [vmem:[%s5276_s21 + $0x108] ss:$16 sps:$4 sm:$0xff]  }
 0x1dd   : > { %2410 = vmatprep.subr.bf16.mxu0 %v4437_v59  ;;  %v4535_v59 = vld [vmem:[%s5276_s21 + $0xe0] ss:$16 sps:$4 sm:$0xff]  }
 0x1df   : > { %2885 = vmatpush1.bf16.msra.mxu1 %v4535_v59  ;;  %v4589_v59 = vld [vmem:[%s5276_s21 + $0x128] ss:$16 sps:$4 sm:$0xff]  }
 0x1e0   : > { %2411 = vmatpush1.bf16.msra.mxu0 %v4435_v60  ;;  %v4508_v60 = vld [vmem:[%s5268_s10 + $0x7e4] ss:$8 sps:$4 sm:$0xff]  }
 0x1e1   : > { %2412 = vmatprep.subr.bf16.mxu0 %v4440_v61  ;;  %v4540_v61 = vld [vmem:[%s5276_s21 + $0x104] ss:$16 sps:$4 sm:$0xff]  }
 0x1e2   : > { %2886 = vmatprep.subr.bf16.mxu1 %v4540_v61  ;;  %v4592_v61 = vld [vmem:[%s5276_s21 + $0x148] ss:$16 sps:$4 sm:$0xff]  }
 0x1e4   : > { %2413 = vmatpush1.bf16.msra.mxu0 %v4438_v62  ;;  %v4506_v62 = vld [vmem:[%s5268_s10 + $0x7e0] ss:$8 sps:$4 sm:$0xff]  }
 0x1e5   : > { %2414 = vmatprep.subr.bf16.mxu0 %v4443_v63  ;;  %v4538_v63 = vld [vmem:[%s5276_s21 + $0x100] ss:$16 sps:$4 sm:$0xff]  }
 0x1e6   : > { %2887 = vmatpush1.bf16.msra.mxu1 %v4538_v63  ;;  %v4595_v63 = vld [vmem:[%s5276_s21 + $0x168] ss:$16 sps:$4 sm:$0xff]  }
 0x1e8   : > { %2415 = vmatpush1.bf16.msra.mxu0 %v4441_v0  ;;  %v4511_v0 = vld [vmem:[%s5268_s10 + $0x7f4] ss:$8 sps:$4 sm:$0xff]  }
 0x1e9   : > { %2416 = vmatprep.subr.bf16.mxu0 %v4446_v1  ;;  %v4543_v1 = vld [vmem:[%s5276_s21 + $0x124] ss:$16 sps:$4 sm:$0xff]  }
 0x1ea   : > { %2888 = vmatprep.subr.bf16.mxu1 %v4543_v1  ;;  %v4598_v1 = vld [vmem:[%s5276_s21 + $0x188] ss:$16 sps:$4 sm:$0xff]  }
 0x1ec   : > { %2417 = vmatpush1.bf16.msra.mxu0 %v4444_v2  ;;  %v4509_v2 = vld [vmem:[%s5268_s10 + $0x7f0] ss:$8 sps:$4 sm:$0xff]  }
 0x1ed   : > { %2418 = vmatprep.subr.bf16.mxu0 %v4449_v3  ;;  %v4541_v3 = vld [vmem:[%s5276_s21 + $0x120] ss:$16 sps:$4 sm:$0xff]  }
 0x1ee   : > { %2889 = vmatpush1.bf16.msra.mxu1 %v4541_v3  ;;  %v4601_v3 = vld [vmem:[%s5276_s21 + $0x1a8] ss:$16 sps:$4 sm:$0xff]  }
 0x1f0   : > { %2419 = vmatpush1.bf16.msra.mxu0 %v4447_v4  ;;  %v4546_v4 = vld [vmem:[%s5276_s21 + $0x144] ss:$16 sps:$4 sm:$0xff]  }
 0x1f1   : > { %2420 = vmatprep.subr.bf16.mxu0 %v4452_v5  ;;  %v3549_v5 = vcombine.low %v5544_v14, %v5544_v14  ;;  %2890 = vmatprep.subr.bf16.mxu1 %v4546_v4  ;;  %v4556_v14 = vld [vmem:[%s5276_s21 + $0x1c0] ss:$16 sps:$4 sm:$0xff]   ;;  %v4606_v4 = vld [vmem:[%s5276_s21 + $0x1cc] ss:$16 sps:$4 sm:$0xff]  }
 0x1f4   : > { %2421 = vmatpush1.bf16.msra.mxu0 %v4450_v6  ;;  %v4544_v6 = vld [vmem:[%s5276_s21 + $0x140] ss:$16 sps:$4 sm:$0xff]  }
 0x1f5   : > { %2422 = vmatprep.subr.bf16.mxu0 %v4455_v7  ;;  %v4549_v7 = vld [vmem:[%s5276_s21 + $0x164] ss:$16 sps:$4 sm:$0xff]   ;;  %2891 = vmatpush1.bf16.msra.mxu1 %v4544_v6  ;;  %v4609_v6 = vld [vmem:[%s5276_s21 + $0x1ec] ss:$16 sps:$4 sm:$0xff]  }
 0x1f6   : > { %2892 = vmatprep.subr.bf16.mxu1 %v4549_v7  ;;  %v4607_v7 = vld [vmem:[%s5276_s21 + $0x1e8] ss:$16 sps:$4 sm:$0xff]  }
 0x1f8   : > { %2423 = vmatpush1.bf16.msra.mxu0 %v4453_v8  ;;  %v4547_v8 = vld [vmem:[%s5276_s21 + $0x160] ss:$16 sps:$4 sm:$0xff]  }
 0x1f9   : > { %2424 = vmatprep.subr.bf16.mxu0 %v4458_v9  ;;  %v4552_v9 = vld [vmem:[%s5276_s21 + $0x184] ss:$16 sps:$4 sm:$0xff]   ;;  %2893 = vmatpush1.bf16.msra.mxu1 %v4547_v8  ;;  %v2480_v8 = vld [vmem:[#allocation3] sm:$0xff] }
 0x1fa   : > { %2894 = vmatprep.subr.bf16.mxu1 %v4552_v9  ;;  %v2481_v9 = vld [vmem:[#allocation3 + $0x8] sm:$0xff] }
 0x1fc   : > { %2425 = vmatpush1.bf16.msra.mxu0 %v4456_v10  ;;  %v4550_v10 = vld [vmem:[%s5276_s21 + $0x180] ss:$16 sps:$4 sm:$0xff]  }
 0x1fd   : > { %2426 = vmatprep.subr.bf16.mxu0 %v4461_v11  ;;  %v4555_v11 = vld [vmem:[%s5276_s21 + $0x1a4] ss:$16 sps:$4 sm:$0xff]   ;;  %2895 = vmatpush1.bf16.msra.mxu1 %v4550_v10 }
 0x1fe   : > { %2896 = vmatprep.subr.bf16.mxu1 %v4555_v11 }
 0x200   : > { %2427 = vmatpush1.bf16.msra.mxu0 %v4459_v12  ;;  %v4553_v12 = vld [vmem:[%s5276_s21 + $0x1a0] ss:$16 sps:$4 sm:$0xff]  }
 0x201   : > { %2437 = vmatprep.subr.bf16.mxu0 %v4466_v13  ;;  %2897 = vmatpush1.bf16.msra.mxu1 %v4553_v12  ;;  %v4558_v13 = vld [vmem:[%s5276_s21 + $0x1c4] ss:$16 sps:$4 sm:$0xff]  }
 0x202   : > { %2898 = vmatprep.subr.bf16.mxu1 %v4558_v13 }
 0x203   : > { %2429 = vmatmul.mubr.bf16.vlgmr.msra.gmra.mrb[0].mxu0 %v3547_v15 }
 0x204   : > { %2438 = vmatpush1.bf16.msra.mxu0 %v4464_v16  ;;  %2469 = vmatprep.mubr.bf16.mxu0 %v3550_v17 }
 0x205   : > { %2439 = vmatprep.subr.bf16.mxu0 %v4469_v18  ;;  %2899 = vmatpush1.bf16.msra.mxu1 %v4556_v14  ;;  %v4561_v18 = vld [vmem:[%s5276_s21 + $0x1e4] ss:$16 sps:$4 sm:$0xff]  }
 0x206   : > { %2900 = vmatprep.subr.bf16.mxu1 %v4561_v18 }
 0x208   : > { %2440 = vmatpush1.bf16.msra.mxu0 %v4467_v19 }
 0x209   : > { %2441 = vmatprep.subr.bf16.mxu0 %v4472_v20  ;;  %v4559_v20 = vld [vmem:[%s5276_s21 + $0x1e0] ss:$16 sps:$4 sm:$0xff]  }
 0x20a   : > { %2901 = vmatpush1.bf16.msra.mxu1 %v4559_v20 }
 0x20c   : > { %2442 = vmatpush1.bf16.msra.mxu0 %v4470_v21  ;;  %v4564_v21 = vld [vmem:[%s5276_s21 + $0xc] ss:$16 sps:$4 sm:$0xff]  }
 0x20d   : > { %2443 = vmatprep.subr.bf16.mxu0 %v4475_v22  ;;  %2911 = vmatprep.subr.bf16.mxu1 %v4564_v21  ;;  %v804_v22 = vlaneseq }
 0x210   : > { %2444 = vmatpush1.bf16.msra.mxu0 %v4473_v23  ;;  %v5616_v23 = vshrl.u32 %v804_v22, 7 }
 0x211   : > { %2445 = vmatprep.subr.bf16.mxu0 %v4478_v24 }
 0x212   : > { %v806_v24 = vsub.s32 0, %v5616_v23 }
 0x214   : > { %2446 = vmatpush1.bf16.msra.mxu0 %v4476_v25  ;;  %v802_v25 = vld [vmem:[%s5274_s26] sm:$0x3] }
 0x215   : > { %2447 = vmatprep.subr.bf16.mxu0 %v4481_v26  ;;  %v810_v26 = vsub.s32 1, %v5616_v23 }
 0x218   : > { %2448 = vmatpush1.bf16.msra.mxu0 %v4479_v27  ;;  %v807_v27 = vrot.slane %v802_v25, %v806_v24 }
 0x219   : > { %2449 = vmatprep.subr.bf16.mxu0 %v4484_v28  ;;  %v811_v28 = vrot.slane %v802_v25, %v810_v26 }
 0x21c   : > { %2450 = vmatpush1.bf16.msra.mxu0 %v4482_v29 }
 0x21d   : > { %2451 = vmatprep.subr.bf16.mxu0 %v4487_v30 }
 0x220   : > { %2452 = vmatpush1.bf16.msra.mxu0 %v4485_v34 }
 0x221   : > { %2453 = vmatprep.subr.bf16.mxu0 %v4490_v36 }
 0x224   : > { %2454 = vmatpush1.bf16.msra.mxu0 %v4488_v38 }
 0x225   : > { %2455 = vmatprep.subr.bf16.mxu0 %v4493_v40  ;;  %v4562_v40 = vld [vmem:[%s5276_s21 + $0x8] ss:$16 sps:$4 sm:$0xff]  }
 0x228   : > { %2456 = vmatpush1.bf16.msra.mxu0 %v4491_v42  ;;  %v4567_v42 = vld [vmem:[%s5276_s21 + $0x2c] ss:$16 sps:$4 sm:$0xff]  }
 0x229   : > { %2457 = vmatprep.subr.bf16.mxu0 %v4496_v46  ;;  %v4570_v46 = vld [vmem:[%s5276_s21 + $0x4c] ss:$16 sps:$4 sm:$0xff]  }
 0x22c   : > { %2458 = vmatpush1.bf16.msra.mxu0 %v4494_v48  ;;  %v4573_v48 = vld [vmem:[%s5276_s21 + $0x6c] ss:$16 sps:$4 sm:$0xff]  }
 0x22d   : > { %2459 = vmatprep.subr.bf16.mxu0 %v4499_v50  ;;  %v4576_v50 = vld [vmem:[%s5276_s21 + $0x8c] ss:$16 sps:$4 sm:$0xff]  }
 0x230   : > { %2460 = vmatpush1.bf16.msra.mxu0 %v4497_v44  ;;  %v4579_v44 = vld [vmem:[%s5276_s21 + $0xac] ss:$16 sps:$4 sm:$0xff]  }
 0x231   : > { %2461 = vmatprep.subr.bf16.mxu0 %v4502_v52  ;;  %v4582_v52 = vld [vmem:[%s5276_s21 + $0xcc] ss:$16 sps:$4 sm:$0xff]  }
 0x234   : > { %2462 = vmatpush1.bf16.msra.mxu0 %v4500_v54  ;;  %v4585_v54 = vld [vmem:[%s5276_s21 + $0xec] ss:$16 sps:$4 sm:$0xff]  }
 0x235   : > { %2463 = vmatprep.subr.bf16.mxu0 %v4505_v56  ;;  %v4588_v56 = vld [vmem:[%s5276_s21 + $0x10c] ss:$16 sps:$4 sm:$0xff]  }
 0x238   : > { %2464 = vmatpush1.bf16.msra.mxu0 %v4503_v58  ;;  %v4591_v58 = vld [vmem:[%s5276_s21 + $0x12c] ss:$16 sps:$4 sm:$0xff]  }
 0x239   : > { %2465 = vmatprep.subr.bf16.mxu0 %v4508_v60  ;;  %v4594_v60 = vld [vmem:[%s5276_s21 + $0x14c] ss:$16 sps:$4 sm:$0xff]  }
 0x23c   : > { %2466 = vmatpush1.bf16.msra.mxu0 %v4506_v62  ;;  %v4597_v62 = vld [vmem:[%s5276_s21 + $0x16c] ss:$16 sps:$4 sm:$0xff]  }
 0x23d   : > { %2467 = vmatprep.subr.bf16.mxu0 %v4511_v0  ;;  %v4600_v0 = vld [vmem:[%s5276_s21 + $0x18c] ss:$16 sps:$4 sm:$0xff]  }
 0x240   : > { %2468 = vmatpush1.bf16.msra.mxu0 %v4509_v2  ;;  %v4603_v2 = vld [vmem:[%s5276_s21 + $0x1ac] ss:$16 sps:$4 sm:$0xff]  }
 0x243   : > { %2470 = vmatmul.mubr.bf16.vlgmr.msra.gmra.mrb[0].mxu0 %v3549_v5  ;;  %v4604_v5 = vld [vmem:[%s5276_s21 + $0x1c8] ss:$16 sps:$4 sm:$0xff]  }
 0x295   : > { %v2266_v15 = vpop.f32.mrb[0].mxu1 }
 0x296   : > { %v2268_v16 = vpop.f32.mrb[1].mxu1  ;;  %v3965_v29 = vadd.f32 %v2266_v15, %v807_v27  ;;  %v4610_v27 = vld [vmem:[#allocation13 + $0x40] sm:$0xff] (!%p3871_p7)  }
 0x297   : > { %v2270_v17 = vpop.f32.mrb[2].mxu1  ;;  %v3967_v30 = vadd.f32 %v2268_v16, %v811_v28  ;;  %v2482_v16 = vld [vmem:[#allocation3 + $0x10] sm:$0xff]  ;;  %v4611_v28 = vld [vmem:[#allocation13 + $0xc0] sm:$0xff] (!%p3871_p7)   ;;  %3921 = vmatprep.subr.bf16.mxu0 (!%p3871_p7), %v4610_v27 }
 0x298   : > { %v2271_v19 = vpop.f32.mrb[3].mxu1  ;;  %v2483_v17 = vld [vmem:[#allocation3 + $0x18] sm:$0xff] }
 0x316   : > { %v2471_v31 = vpop.f32.mrb[0].mxu0 }
 0x317   : > { %v3966_v32 = vadd.f32 %v3965_v29, %v2471_v31  ;;  %v2473_v33 = vpop.f32.mrb[1].mxu0  ;;  %v4612_v29 = vld [vmem:[#allocation13] sm:$0xff] (!%p3871_p7)   ;;  %v4614_v31 = vld [vmem:[#allocation13 + $0x48] sm:$0xff] (!%p3871_p7)  }
 0x318   : > { %v3968_v34 = vadd.f32 %v3967_v30, %v2473_v33  ;;  %v2475_v35 = vpop.f32.mrb[2].mxu0  ;;  %v4613_v30 = vld [vmem:[#allocation13 + $0x80] sm:$0xff] (!%p3871_p7)   ;;  %3922 = vmatpush3.bf16.msra.mxu0 (!%p3871_p7), %v4612_v29  ;;  %v4616_v33 = vld [vmem:[#allocation13 + $0x8] sm:$0xff] (!%p3871_p7)  }
 0x319   : > { %v2478_v36 = vmax.f32 %v3966_v32, 0.0  ;;  %v2476_v37 = vpop.f32.mrb[3].mxu0  ;;  %v4615_v32 = vld [vmem:[#allocation13 + $0xc8] sm:$0xff] (!%p3871_p7)   ;;  %3923 = vmatprep.subr.bf16.mxu0 (!%p3871_p7), %v4614_v31  ;;  %v4618_v35 = vld [vmem:[#allocation13 + $0x50] sm:$0xff] (!%p3871_p7)  }
 0x31a   : > { %v2479_v38 = vmax.f32 %v3968_v34, 0.0  ;;  %v4617_v34 = vld [vmem:[#allocation13 + $0x88] sm:$0xff] (!%p3871_p7)   ;;  %v4620_v37 = vld [vmem:[#allocation13 + $0x10] sm:$0xff] (!%p3871_p7)  }
 0x31b   : > { %v5626_v41 = vpack.c.bf16 %v2478_v36, %v2478_v36  ;;  %v4619_v36 = vld [vmem:[#allocation13 + $0xd0] sm:$0xff] (!%p3871_p7)  }
 0x31c   : > { %v2485_v39 = vpack.c.bf16 %v2479_v38, %v2479_v38  ;;  %3924 = vmatpush3.bf16.msra.mxu0 (!%p3871_p7), %v4616_v33  ;;  %v4621_v38 = vld [vmem:[#allocation13 + $0x90] sm:$0xff] (!%p3871_p7)  }
 0x31d   : > { %3925 = vmatprep.subr.bf16.mxu0 (!%p3871_p7), %v4618_v35 }
 0x31e   : > { %2902 = vmatprep.mubr.bf16.mxu1 %v2485_v39 }
 0x31f   : > { %2903 = vmatmul.mubr.bf16.vlgmr.msra.gmra.mrb[4].mxu1 %v5626_v41 }
 0x320   : > { %2912 = vmatpush1.bf16.msra.mxu1 %v4562_v40  ;;  %2943 = vmatprep.mubr.bf16.mxu1 %v2485_v39  ;;  %v4622_v39 = vld [vmem:[#allocation13 + $0x58] sm:$0xff] (!%p3871_p7)  }
 0x321   : > { %2913 = vmatprep.subr.bf16.mxu1 %v4567_v42  ;;  %3926 = vmatpush3.bf16.msra.mxu0 (!%p3871_p7), %v4620_v37  ;;  %v4623_v40 = vld [vmem:[#allocation13 + $0xd8] sm:$0xff] (!%p3871_p7)  }
 0x322   : > { %3927 = vmatprep.subr.bf16.mxu0 (!%p3871_p7), %v4622_v39  ;;  %v4625_v42 = vld [vmem:[#allocation13 + $0x98] sm:$0xff] (!%p3871_p7)  }
 0x324   : > { %2914 = vmatpush1.bf16.msra.mxu1 %v4565_v45  ;;  %v4626_v45 = vld [vmem:[#allocation13 + $0x60] sm:$0xff] (!%p3871_p7)  }
 0x325   : > { %2915 = vmatprep.subr.bf16.mxu1 %v4570_v46  ;;  %v4627_v46 = vld [vmem:[#allocation13 + $0xe0] sm:$0xff] (!%p3871_p7)  }
 0x328   : > { %2916 = vmatpush1.bf16.msra.mxu1 %v4568_v47  ;;  %v4628_v47 = vld [vmem:[#allocation13 + $0x20] sm:$0xff] (!%p3871_p7)  }
 0x329   : > { %2917 = vmatprep.subr.bf16.mxu1 %v4573_v48  ;;  %v4629_v48 = vld [vmem:[#allocation13 + $0xa0] sm:$0xff] (!%p3871_p7)  }
 0x32c   : > { %2918 = vmatpush1.bf16.msra.mxu1 %v4571_v49  ;;  %v4630_v49 = vld [vmem:[#allocation13 + $0x68] sm:$0xff] (!%p3871_p7)  }
 0x32d   : > { %2919 = vmatprep.subr.bf16.mxu1 %v4576_v50  ;;  %v4631_v50 = vld [vmem:[#allocation13 + $0xe8] sm:$0xff] (!%p3871_p7)  }
 0x330   : > { %2920 = vmatpush1.bf16.msra.mxu1 %v4574_v43  ;;  %v4632_v43 = vld [vmem:[#allocation13 + $0x28] sm:$0xff] (!%p3871_p7)  }
 0x331   : > { %2921 = vmatprep.subr.bf16.mxu1 %v4579_v44  ;;  %v4633_v44 = vld [vmem:[#allocation13 + $0xa8] sm:$0xff] (!%p3871_p7)  }
 0x334   : > { %2922 = vmatpush1.bf16.msra.mxu1 %v4577_v51  ;;  %v4634_v51 = vld [vmem:[#allocation13 + $0x70] sm:$0xff] (!%p3871_p7)  }
 0x335   : > { %2923 = vmatprep.subr.bf16.mxu1 %v4582_v52  ;;  %v4635_v52 = vld [vmem:[#allocation13 + $0xf0] sm:$0xff] (!%p3871_p7)  }
 0x338   : > { %2924 = vmatpush1.bf16.msra.mxu1 %v4580_v53  ;;  %v4636_v53 = vld [vmem:[#allocation13 + $0x30] sm:$0xff] (!%p3871_p7)  }
 0x339   : > { %2925 = vmatprep.subr.bf16.mxu1 %v4585_v54  ;;  %v4637_v54 = vld [vmem:[#allocation13 + $0xb0] sm:$0xff] (!%p3871_p7)  }
 0x33c   : > { %2926 = vmatpush1.bf16.msra.mxu1 %v4583_v55  ;;  %v4638_v55 = vld [vmem:[#allocation13 + $0x78] sm:$0xff] (!%p3871_p7)  }
 0x33d   : > { %2927 = vmatprep.subr.bf16.mxu1 %v4588_v56  ;;  %v2984_v56 = vsub.s32 (!%p3871_p7), 3, %v5616_v23 }
 0x340   : > { %2928 = vmatpush1.bf16.msra.mxu1 %v4586_v57  ;;  %v4639_v57 = vld [vmem:[#allocation13 + $0xf8] sm:$0xff] (!%p3871_p7)  }
 0x341   : > { %2929 = vmatprep.subr.bf16.mxu1 %v4591_v58  ;;  %v2980_v58 = vsub.s32 (!%p3871_p7), 2, %v5616_v23 }
 0x344   : > { %2930 = vmatpush1.bf16.msra.mxu1 %v4589_v59  ;;  %v4640_v59 = vld [vmem:[#allocation13 + $0x38] sm:$0xff] (!%p3871_p7)  }
 0x345   : > { %2931 = vmatprep.subr.bf16.mxu1 %v4594_v60  ;;  %v4641_v60 = vld [vmem:[#allocation13 + $0xb8] sm:$0xff] (!%p3871_p7)  }
 0x348   : > { %2932 = vmatpush1.bf16.msra.mxu1 %v4592_v61 }
 0x349   : > { %2933 = vmatprep.subr.bf16.mxu1 %v4597_v62  ;;  %v2968_v62 = vld [vmem:[#allocation12] sm:$0xf] (!%p3871_p7) }
 0x34c   : > { %2934 = vmatpush1.bf16.msra.mxu1 %v4595_v63 }
 0x34d   : > { %2935 = vmatprep.subr.bf16.mxu1 %v4600_v0  ;;  %v2977_v0 = vrot.slane (!%p3871_p7), %v2968_v62, %v810_v26  ;;  %v3872_v26 = vld [vmem:[#allocation15] ss:$0 sm:$0xff] (!%p3871_p7) }
 0x350   : > { %2936 = vmatpush1.bf16.msra.mxu1 %v4598_v1  ;;  %v2985_v1 = vrot.slane (!%p3871_p7), %v2968_v62, %v2984_v56 }
 0x351   : > { %2937 = vmatprep.subr.bf16.mxu1 %v4603_v2 }
 0x354   : > { %2938 = vmatpush1.bf16.msra.mxu1 %v4601_v3  ;;  %v2973_v3 = vrot.slane (!%p3871_p7), %v2968_v62, %v806_v24 }
 0x355   : > { %2939 = vmatprep.subr.bf16.mxu1 %v4606_v4 }
 0x358   : > { %2940 = vmatpush1.bf16.msra.mxu1 %v4604_v5  ;;  %v2981_v5 = vrot.slane (!%p3871_p7), %v2968_v62, %v2980_v58 }
 0x359   : > { %2941 = vmatprep.subr.bf16.mxu1 %v4609_v6 }
 0x35c   : > { %2942 = vmatpush1.bf16.msra.mxu1 %v4607_v7 }
 0x35d   : > { %3943 = vmatprep.subr.bf16.mxu1 (!%p3871_p7), %v4611_v28 }
 0x35f   : > { %2944 = vmatmul.mubr.bf16.vlgmr.msra.gmra.mrb[8].mxu1 %v5626_v41  ;;  %v4624_v41 = vld [vmem:[#allocation13 + $0x18] sm:$0xff] (!%p3871_p7)  }
 0x360   : > { %3944 = vmatpush3.bf16.msra.mxu1 (!%p3871_p7), %v4613_v30  ;;  %3928 = vmatpush3.bf16.msra.mxu0 (!%p3871_p7), %v4624_v41 }
 0x361   : > { %3945 = vmatprep.subr.bf16.mxu1 (!%p3871_p7), %v4615_v32  ;;  %3929 = vmatprep.subr.bf16.mxu0 (!%p3871_p7), %v4626_v45 }
 0x364   : > { %3946 = vmatpush3.bf16.msra.mxu1 (!%p3871_p7), %v4617_v34  ;;  %3930 = vmatpush3.bf16.msra.mxu0 (!%p3871_p7), %v4628_v47 }
 0x365   : > { %3947 = vmatprep.subr.bf16.mxu1 (!%p3871_p7), %v4619_v36  ;;  %3931 = vmatprep.subr.bf16.mxu0 (!%p3871_p7), %v4630_v49 }
 0x368   : > { %3948 = vmatpush3.bf16.msra.mxu1 (!%p3871_p7), %v4621_v38  ;;  %3932 = vmatpush3.bf16.msra.mxu0 (!%p3871_p7), %v4632_v43 }
 0x369   : > { %3949 = vmatprep.subr.bf16.mxu1 (!%p3871_p7), %v4623_v40  ;;  %3933 = vmatprep.subr.bf16.mxu0 (!%p3871_p7), %v4634_v51 }
 0x36c   : > { %3950 = vmatpush3.bf16.msra.mxu1 (!%p3871_p7), %v4625_v42  ;;  %3934 = vmatpush3.bf16.msra.mxu0 (!%p3871_p7), %v4636_v53 }
 0x36d   : > { %3951 = vmatprep.subr.bf16.mxu1 (!%p3871_p7), %v4627_v46  ;;  %3935 = vmatprep.subr.bf16.mxu0 (!%p3871_p7), %v4638_v55 }
 0x370   : > { %3952 = vmatpush3.bf16.msra.mxu1 (!%p3871_p7), %v4629_v48  ;;  %3936 = vmatpush3.bf16.msra.mxu0 (!%p3871_p7), %v4640_v59 }
 0x371   : > { %3953 = vmatprep.subr.bf16.mxu1 (!%p3871_p7), %v4631_v50 }
 0x374   : > { %3954 = vmatpush3.bf16.msra.mxu1 (!%p3871_p7), %v4633_v44 }
 0x375   : > { %3955 = vmatprep.subr.bf16.mxu1 (!%p3871_p7), %v4635_v52 }
 0x378   : > { %3956 = vmatpush3.bf16.msra.mxu1 (!%p3871_p7), %v4637_v54 }
 0x379   : > { %3957 = vmatprep.subr.bf16.mxu1 (!%p3871_p7), %v4639_v57 }
 0x37c   : > { %3958 = vmatpush3.bf16.msra.mxu1 (!%p3871_p7), %v4641_v60 }
 0x3f2   : > { %v2904_v10 = vpop.f32.mrb[4].mxu1 }
 0x3f3   : > { %v2952_v11 = vadd.f32 %v2904_v10, %v2480_v8  ;;  %v2906_v12 = vpop.f32.mrb[5].mxu1 }
 0x3f4   : > { %v2953_v13 = vadd.f32 %v2906_v12, %v2481_v9  ;;  %v2908_v14 = vpop.f32.mrb[6].mxu1 }
 0x3f5   : > { %2956 = vst [vmem:[#allocation3] sm:$0xff] %v2952_v11  ;;  %v2909_v15 = vpop.f32.mrb[7].mxu1 }
 0x3f6   : > { %2957 = vst [vmem:[#allocation3 + $0x8] sm:$0xff] %v2953_v13 }
 0x3fc   : > { %v2964_v2 = vld [vmem:[#allocation3] sm:$0xff] (!%p3871_p7) }
 0x3fd   : > { %v2965_v61 = vld [vmem:[#allocation3 + $0x8] sm:$0xff] (!%p3871_p7)  ;;  %v2990_v8 = vadd.f32 (!%p3871_p7), %v2973_v3, %v2964_v2 }
 0x3fe   : > { %v2991_v6 = vadd.f32 (!%p3871_p7), %v2977_v0, %v2965_v61 }
 0x3ff   : > { %v2994_v12 = vmax.f32 (!%p3871_p7), %v2990_v8, 0.0 }
 0x400   : > { %v2995_v10 = vmax.f32 (!%p3871_p7), %v2991_v6, 0.0 }
 0x402   : > { %v2999_v14 = vpack.c.bf16 (!%p3871_p7), %v2995_v10, %v2995_v10 }
 0x404   : > { %3297 = vmatprep.mubr.bf16.mxu0 (!%p3871_p7), %v2999_v14 }
 0x430   : > { %2963 = sbr.rel (%p3871_p7) target bundleno = 1311 (0x51f), region = 84 }
 0x432   : > { %v2945_v18 = vpop.f32.mrb[8].mxu1 }
 0x433   : > { %v2954_v19 = vadd.f32 %v2945_v18, %v2482_v16  ;;  %v2947_v20 = vpop.f32.mrb[9].mxu1  ;;  %v2998_v16 = vpack.c.bf16 (!%p3871_p7), %v2994_v12, %v2994_v12 }
 0x434   : > { %v2955_v21 = vadd.f32 %v2947_v20, %v2483_v17  ;;  %v2949_v22 = vpop.f32.mrb[10].mxu1 }
 0x435   : > { %2958 = vst [vmem:[#allocation3 + $0x10] sm:$0xff] %v2954_v19  ;;  %v2950_v25 = vpop.f32.mrb[11].mxu1  ;;  %3298 = vmatmul.mubr.bf16.vlgmr.msra.gmra.mrb[0].mxu0 (!%p3871_p7), %v2998_v16 }
 0x436   : > { %2959 = vst [vmem:[#allocation3 + $0x18] sm:$0xff] %v2955_v21 }
 0x43c   : > { %v2966_v4 = vld [vmem:[#allocation3 + $0x10] sm:$0xff] }
 0x43d   : > { %v2967_v63 = vld [vmem:[#allocation3 + $0x18] sm:$0xff]  ;;  %v2992_v9 = vadd.f32 %v2981_v5, %v2966_v4 }
 0x43e   : > { %v2993_v7 = vadd.f32 %v2985_v1, %v2967_v63 }
 0x43f   : > { %v2996_v13 = vmax.f32 %v2992_v9, 0.0 }
 0x440   : > { %v2997_v11 = vmax.f32 %v2993_v7, 0.0 }
 0x441   : > { %v3000_v17 = vpack.c.bf16 %v2996_v13, %v2996_v13 }
 0x442   : > { %v3001_v15 = vpack.c.bf16 %v2997_v11, %v2997_v11 }
 0x444   : > { %3337 = vmatprep.mubr.bf16.mxu1 %v3001_v15 }
 0x445   : > { %3338 = vmatmul.mubr.bf16.vlgmr.msra.gmra.mrb[0].mxu1 %v3000_v17 }
 0x508   : > { %v3937_v23 = vpop.f32.mrb[0].mxu0 }
 0x509   : > { %v3938_v18 = vpop.f32.mrb[1].mxu0 }
 0x50a   : > { %v3939_v20 = vadd.f32 %v3938_v18, %v3937_v23  ;;  %v3940_v22 = vpop.f32.mrb[2].mxu0 }
 0x50b   : > { %v3941_v27 = vpop.f32.mrb[3].mxu0 }
 0x50c   : > { %v3300_v29 = vadd.f32 %v3939_v20, %v3872_v26 }
 0x518   : > { %v3959_v24 = vpop.f32.mrb[0].mxu1 }
 0x519   : > { %v3960_v19 = vpop.f32.mrb[1].mxu1 }
 0x51a   : > { %v3961_v21 = vadd.f32 %v3960_v19, %v3959_v24  ;;  %v3962_v25 = vpop.f32.mrb[2].mxu1 }
 0x51b   : > { %v3963_v28 = vpop.f32.mrb[3].mxu1 }
 0x51c   : > { %v3340_v30 = vadd.f32 %v3961_v21, %v3300_v29 }
 0x51e   : > { %3345 = vst [vmem:[#allocation16] sm:$0xff] %v3340_v30 }
 0x51f PF: > { %p4051_p12 = scmp.eq.s32.totalorder %s5027_s30, 3  ;;  %s4957_s15 = smov [#allocation16]  }
 0x520   : > { %s3355_s20 = sshll.u32 %s4957_s15, 4  ;;  %s3356_s20 = int_to_ptr.vmem [resolvable:$true] %s3355_s20 }
 0x521   : > { %s4844_s23 = scalar_lea.vmem %s3356_s20, 128  ;;  %p4851_p9 = scmp.lt.s32.totalorder %s3356_s20, %s3356_s20 }
 0x522   : > { %p4845_p1 = scmp.ne.s32.totalorder %s3356_s20, %s4844_s23  ;;  %p4852_p4 = scmp.lt.s32.totalorder %s4844_s23, %s4844_s23 }
 0x524   : > { %p4846_p5 = pnand %p4845_p1, %p4051_p12  ;;  %p4853_p13 = por %p4852_p4, %p4851_p9 }
 0x526   : > { %p4847_p11 = pneg %p4846_p5 }
 0x528   : > { %p4854_p2 = pnand %p4853_p13, %p4847_p11 }
 0x52a   : > { %4857 = shalt.err (!%p4854_p2)
}
 0x52b   : > { %s5767_s27 = sld [smem:[#allocation31_spill]] }
 0x531   : > { %s5768_s19 = smov %s5767_s27  ;;  %s4858_s12 = scalar_lea.hbm %s5767_s27, 128 }
 0x532   : > { %p4859_p10 = scmp.ne.s32.totalorder %s5768_s19, %s4858_s12  ;;  %p4864_p0 = scmp.lt.u32.totalorder %s4858_s12, %s5768_s19 }
 0x534   : > { %p4860_p6 = pnand %p4859_p10, %p4051_p12 }
 0x536   : > { %p4861_p8 = pneg %p4860_p6 }
 0x538   : > { %p4866_p3 = pnand %p4864_p0, %p4861_p8 }
 0x53a   : > { %4869 = shalt.err (!%p4866_p3)
}
 0x53b   : > { %4016 = dma.vmem_to_hbm [thread:$0]  (%p4051_p12), %s3356_s20, 128, %s5768_s19, [#allocation6]  }
 0x53c   : > { %4915 = dma.done.wait (%p4051_p12), [#allocation6], 128  }
 0x53d   : > { %4917 = vsyncadd (%p4051_p12), [#allocation6], 4294967168 }
 0x53e PF: > { %s26_s29 = sadd.s32 1, %s4940_s29   ;;  %s5769_s8 = sld [smem:[#allocation23_spill]] }
 0x53f   : > { %p23_p7 = scmp.ge.s32.totalorder %s26_s29, 6   ;;  %s5770_s26 = sld [smem:[#allocation27_spill]] }
 0x540   : > { %s5771_s10 = sld [smem:[#allocation26_spill]]  ;;  %s5772_s24 = smov %s4924_s25 }
 0x541   : > { %s5774_s27 = smov %s4936_s28  ;;  %25 = sbr.rel (!%p23_p7) target bundleno = 14 (0xe), region = 136 }
 0x544   : > { %s5773_s25 = smov %s5769_s8 }
 0x546   : > { %s5775_s28 = smov %s5771_s10 }
 0x548   :  { %3368 = vsyncpa [#allocation5], 1 }
 0x549   :  { %3370 = vsyncpa [#allocation5 + $0x1], 1 }
 0x54a   :  { %3371 = vsyncpa [#allocation8], 1 }
 0x54b   :  { %3373 = vsyncpa [#allocation8 + $0x1], 1 }
 0x54c   :  { %3374 = vsyncpa [#allocation11], 1 }
 0x54d   :  { %3376 = vsyncpa [#allocation11 + $0x1], 1 }
 0x54e   :  { %3377 = vsyncpa [#allocation14], 1 }
 0x54f   :  { %3378 = vsyncpa [#allocation6], 1 }
 0x550   :  { %3380 = vsyncpa [#allocation6 + $0x1], 1 }

</bundles_post_ra>
